<compile_context>
chip_gen: v6e
topology: v6e:2x2x1
jax: 0.10.0
libtpu: 0.0.40
codegen_flags: <defaults>
</compile_context>

<pallas_src>
import jax
import jax.numpy as jnp
from jax import lax
from jax.experimental import pallas as pl
from jax.experimental.pallas import tpu as pltpu


def _round_up(n, m):
    return ((n + m - 1) // m) * m


# ---------------------------------------------------------------------------
# Kernels
# ---------------------------------------------------------------------------

def _bilstm_kernel(x_ref, len_ref, wih_ref, whh_ref, b_ref, out_ref,
                   xp_ref, h_ref, c_ref):
    """Fused bidirectional LSTM over one (batch-block, time-chunk) tile.

    Grid: (num_batch_blocks ["parallel"], num_time_chunks ["arbitrary"]).
    Hidden/cell state is carried across time chunks in VMEM scratch and
    re-initialised at the first time chunk of every batch block.

    x_ref:   [Tc, Bblk, 2Ep] bf16  cols 0:Ep fwd emb, Ep:2Ep within-length
                                   reversed emb (both zero-padded E -> Ep).
    len_ref: [Bblk, 1] int32       sequence lengths (0 for padded batch rows).
    wih_ref: [2Ep, 8Ep] bf16       block-diag fused input weights (x @ W).
    whh_ref: [2Ep, 8Ep] bf16       block-diag fused hidden weights (h @ W).
    b_ref:   [1, 8Ep]  f32         b_ih + b_hh.
    out_ref: [Tc, Bblk, 2Ep] f32   masked hidden states (fwd | bwd-reversed).
    xp_ref:  [Tc, Bblk, 8Ep] f32   scratch: hoisted input projection.
    h_ref, c_ref: [Bblk, 2Ep] f32  scratch: state carried across time chunks.

    Fused columns (width Ep each, PyTorch gate order i,f,g,o):
      [i_f, i_b, f_f, f_b, g_f, g_b, o_f, o_b]  -> every in-kernel gate slice
    is 2Ep wide (a 128-lane multiple) and 128-lane aligned.
    """
    Tc, Bblk, E2 = x_ref.shape            # E2 = 2*Ep
    E8 = wih_ref.shape[1]                 # E8 = 8*Ep
    ti = pl.program_id(1)

    @pl.when(ti == 0)
    def _():
        h_ref[...] = jnp.zeros_like(h_ref)
        c_ref[...] = jnp.zeros_like(c_ref)

    # Hoisted input projection for this time chunk: one bf16 MXU matmul.
    x_all = x_ref[...].reshape(Tc * Bblk, E2)
    xp_ref[...] = (
        jnp.dot(x_all, wih_ref[...], preferred_element_type=jnp.float32)
        + b_ref[...]
    ).reshape(Tc, Bblk, E8)

    whh = whh_ref[...]                     # hoist recurrent weights
    lens = len_ref[...]                    # [Bblk, 1] int32
    t0 = ti * Tc

    def step(s, carry):
        h, c = carry                                           # [Bblk, 2Ep] f32
        gates = xp_ref[s] + jnp.dot(h.astype(jnp.bfloat16), whh,
                                    preferred_element_type=jnp.float32)
        i_g = jax.nn.sigmoid(gates[:, 0 * E2:1 * E2])
        f_g = jax.nn.sigmoid(gates[:, 1 * E2:2 * E2])
        g_g = jnp.tanh(gates[:, 2 * E2:3 * E2])
        o_g = jax.nn.sigmoid(gates[:, 3 * E2:4 * E2])
        c_new = f_g * c + i_g * g_g
        h_new = o_g * jnp.tanh(c_new)
        m = (t0 + s) < lens                                    # [Bblk, 1] bool
        h = jnp.where(m, h_new, h)          # freeze state past each length
        c = jnp.where(m, c_new, c)
        out_ref[s] = jnp.where(m, h_new, 0.0)   # lane-dense [Bblk, 2Ep] store
        return h, c

    # Tc is small & static: fully unroll for LLO cross-iteration scheduling.
    h_fin, c_fin = lax.fori_loop(0, Tc, step, (h_ref[...], c_ref[...]),
                                 unroll=True)
    h_ref[...] = h_fin
    c_ref[...] = c_fin


def _heads_kernel(x_ref, w1_ref, b1_ref, w2_ref, b2_ref, out_ref):
    """Fused mu/sigma heads on a [blk, E] row block of summed LSTM outputs.

    Reproduces the reference forward exactly (mu_fc1 applied twice, mu_fc2 dead):
        mus    = mu_fc1(relu(mu_fc1(x)))
        sigmas = softplus(sigma_fc2(relu(sigma_fc1(x))))
    w1:  [E, 2Ep]   = [mu_fc1_w | sigma_fc1_w]    (x @ w layout, zero-padded)
    w2:  [2Ep, 2Ep] = block-diag(mu_fc1_w, sigma_fc2_w)
    out: [blk, 2Ep] f32 = [mu | sigma], single >=128-lane store.
    """
    ep = out_ref.shape[-1] // 2
    h = jnp.maximum(
        jnp.dot(x_ref[...], w1_ref[...], preferred_element_type=jnp.float32)
        + b1_ref[...], 0.0)
    pre = (jnp.dot(h.astype(jnp.bfloat16), w2_ref[...],
                   preferred_element_type=jnp.float32) + b2_ref[...])
    # Softplus (beta=1, threshold=20, torch defaults) only on the sigma half.
    s_pre = pre[:, ep:]
    sp = jnp.where(s_pre > 20.0, s_pre,
                   jnp.log1p(jnp.exp(jnp.minimum(s_pre, 20.0))))
    out_ref[...] = jnp.concatenate([pre[:, :ep], sp], axis=-1)


# ---------------------------------------------------------------------------
# Wrapper / glue
# ---------------------------------------------------------------------------

def embed_align_encoder_forward(params, sentence, lengths):
    """sentence: [B, T] int32 token ids; lengths: [B] int32 (each in (0, T])."""
    B, T = sentence.shape
    E = params["embed"].shape[1]
    W_ih, W_hh, bias = params["lstm_fused"]
    W1, b1, W2, b2 = params["heads_fused"]
    Ep = W_ih.shape[0] // 2                 # padded per-direction width

    # --- XLA glue: embedding gather + within-length reversal (time-major) ---
    emb_tm = jnp.take(params["embed"], sentence.T, axis=0)           # [T, B, E]
    t_idx = jnp.arange(T, dtype=jnp.int32)[None, :]
    valid = t_idx < lengths[:, None]                                  # [B, T]
    rev_idx = jnp.where(valid, lengths[:, None] - 1 - t_idx, t_idx)   # [B, T]
    rev_tm = rev_idx.T[:, :, None]                                    # [T, B, 1]
    emb_rev_tm = jnp.take_along_axis(emb_tm, rev_tm, axis=0)          # [T, B, E]
    # TODO(synk): the reverse/un-reverse gathers and the final fwd+bwd sum are
    # still XLA glue; folding them into the kernels needs a data-dependent row
    # gather (pl.Element + scalar prefetch) in the heads kernel.

    # --- padding to hardware-friendly shapes --------------------------------
    Bblk = 128 if B > 128 else _round_up(B, 8)    # sublane-dense batch block
    Bp = _round_up(B, Bblk)
    Tc = min(T, 32)                                # unrolled steps per chunk
    Tp = _round_up(T, Tc)

    def pad3(a):
        return jnp.pad(a, ((0, Tp - T), (0, Bp - B), (0, Ep - E)))

    x_stk = jnp.concatenate([pad3(emb_tm), pad3(emb_rev_tm)],
                            axis=-1).astype(jnp.bfloat16)        # [Tp, Bp, 2Ep]
    lens2d = jnp.pad(lengths.astype(jnp.int32), (0, Bp - B)).reshape(Bp, 1)

    # --- bidirectional LSTM kernel -------------------------------------------
    nB, nT = Bp // Bblk, Tp // Tc
    out_tm = pl.pallas_call(
        _bilstm_kernel,
        out_shape=jax.ShapeDtypeStruct((Tp, Bp, 2 * Ep), jnp.float32),
        grid=(nB, nT),
        in_specs=[
            pl.BlockSpec((Tc, Bblk, 2 * Ep), lambda bi, ti: (ti, bi, 0)),
            pl.BlockSpec((Bblk, 1), lambda bi, ti: (bi, 0)),
            pl.BlockSpec((2 * Ep, 8 * Ep), lambda bi, ti: (0, 0)),
            pl.BlockSpec((2 * Ep, 8 * Ep), lambda bi, ti: (0, 0)),
            pl.BlockSpec((1, 8 * Ep), lambda bi, ti: (0, 0)),
        ],
        out_specs=pl.BlockSpec((Tc, Bblk, 2 * Ep), lambda bi, ti: (ti, bi, 0)),
        scratch_shapes=[
            pltpu.VMEM((Tc, Bblk, 8 * Ep), jnp.float32),   # hoisted projection
            pltpu.VMEM((Bblk, 2 * Ep), jnp.float32),       # h carry
            pltpu.VMEM((Bblk, 2 * Ep), jnp.float32),       # c carry
        ],
        compiler_params=pltpu.CompilerParams(
            dimension_semantics=("parallel", "arbitrary"),
            vmem_limit_bytes=32 * 1024 * 1024),
        cost_estimate=pl.CostEstimate(
            flops=4 * Tp * Bp * (2 * Ep) * (8 * Ep),
            transcendentals=5 * Tp * Bp * (2 * Ep),
            bytes_accessed=(2 * Tp * Bp * (2 * Ep)          # x_stk (bf16)
                            + 4 * Tp * Bp * (2 * Ep)        # out (f32)
                            + 2 * 2 * (2 * Ep) * (8 * Ep)   # weights (bf16)
                            + 4 * (8 * Ep) + 4 * Bp)),
    )(x_stk, lens2d, W_ih, W_hh, bias)

    # --- split directions, un-reverse backward within length, sum -----------
    out_f = out_tm[:T, :B, :E]
    out_b = jnp.take_along_axis(out_tm[:T, :B, Ep:Ep + E], rev_tm, axis=0)
    lstm_sum = out_f + out_b                                        # [T, B, E]

    # --- fused mu/sigma heads, gridded over rows ------------------------------
    N = B * T
    x_rows = jnp.transpose(lstm_sum, (1, 0, 2)).reshape(N, E).astype(jnp.bfloat16)
    blk = min(4096, _round_up(N, 16))
    Np = _round_up(N, blk)
    if Np != N:
        x_rows = jnp.pad(x_rows, ((0, Np - N), (0, 0)))

    head_out = pl.pallas_call(
        _heads_kernel,
        out_shape=jax.ShapeDtypeStruct((Np, 2 * Ep), jnp.float32),
        grid=(Np // blk,),
        in_specs=[
            pl.BlockSpec((blk, E), lambda i: (i, 0)),
            pl.BlockSpec((E, 2 * Ep), lambda i: (0, 0)),
            pl.BlockSpec((1, 2 * Ep), lambda i: (0, 0)),
            pl.BlockSpec((2 * Ep, 2 * Ep), lambda i: (0, 0)),
            pl.BlockSpec((1, 2 * Ep), lambda i: (0, 0)),
        ],
        out_specs=pl.BlockSpec((blk, 2 * Ep), lambda i: (i, 0)),
        compiler_params=pltpu.CompilerParams(
            dimension_semantics=("parallel",),
            vmem_limit_bytes=32 * 1024 * 1024),
        cost_estimate=pl.CostEstimate(
            flops=2 * Np * E * (2 * Ep) + 2 * Np * (2 * Ep) * (2 * Ep),
            transcendentals=Np * Ep,
            bytes_accessed=(2 * Np * E + 4 * Np * (2 * Ep)
                            + 2 * (E + 2 * Ep) * (2 * Ep) + 8 * (2 * Ep))),
    )(x_rows, W1, b1, W2, b2)

    head_out = head_out[:N]
    mus = head_out[:, :E].reshape(B, T, E)
    sigmas = head_out[:, Ep:Ep + E].reshape(B, T, E)
    return mus, sigmas


# ---------------------------------------------------------------------------
# Deterministic parameter construction (PyTorch-style uniform(-1/sqrt(E), 1/sqrt(E)))
# ---------------------------------------------------------------------------

def _per_gate_xw(w, E):
    """PyTorch [4E, E] (gate blocks i,f,g,o of [out,in]) -> [E, 4E] so x @ w works."""
    return jnp.transpose(w.reshape(4, E, E), (2, 0, 1)).reshape(E, 4 * E)


def _fuse_bidir(wih_f, whh_f, b_f, wih_b, whh_b, b_b, E, Ep):
    """Block-diag fused weights [2Ep, 8Ep]; gate-major / direction-minor columns."""
    W_ih = jnp.zeros((2 * Ep, 8 * Ep), jnp.float32)
    W_hh = jnp.zeros((2 * Ep, 8 * Ep), jnp.float32)
    bias = jnp.zeros((1, 8 * Ep), jnp.float32)
    for g in range(4):
        src = slice(g * E, (g + 1) * E)
        cf = slice(g * 2 * Ep, g * 2 * Ep + E)             # fwd cols of gate g
        cb = slice(g * 2 * Ep + Ep, g * 2 * Ep + Ep + E)   # bwd cols of gate g
        W_ih = W_ih.at[0:E, cf].set(wih_f[:, src])
        W_ih = W_ih.at[Ep:Ep + E, cb].set(wih_b[:, src])
        W_hh = W_hh.at[0:E, cf].set(whh_f[:, src])
        W_hh = W_hh.at[Ep:Ep + E, cb].set(whh_b[:, src])
        bias = bias.at[0, cf].set(b_f[src])
        bias = bias.at[0, cb].set(b_b[src])
    return W_ih.astype(jnp.bfloat16), W_hh.astype(jnp.bfloat16), bias


def init_params(key, vocab_size, embed_size):
    E = embed_size
    Ep = _round_up(E, 64)          # per-direction padded width (2*Ep % 128 == 0)
    bound = 1.0 / (E ** 0.5)
    keys = jax.random.split(key, 16)

    def u(k, shape):
        return jax.random.uniform(k, shape, jnp.float32, -bound, bound)

    def lstm_dir(k):
        k1, k2, k3, k4 = jax.random.split(k, 4)
        w_ih = u(k1, (4 * E, E))   # PyTorch layout [4E, E], gate order i,f,g,o
        w_hh = u(k2, (4 * E, E))
        b_ih = u(k3, (4 * E,))
        b_hh = u(k4, (4 * E,))
        return _per_gate_xw(w_ih, E), _per_gate_xw(w_hh, E), b_ih + b_hh

    wih_f, whh_f, b_f = lstm_dir(keys[1])
    wih_b, whh_b, b_b = lstm_dir(keys[2])
    lstm_fused = _fuse_bidir(wih_f, whh_f, b_f, wih_b, whh_b, b_b, E, Ep)

    # Head linear layers; w pre-transposed so linear(x) = x @ w + b.
    mu1_w = u(keys[3], (E, E)).T
    mu1_b = u(keys[4], (E,))
    mu2_w = u(keys[5], (E, E)).T          # mu_fc2: exists but dead in forward
    mu2_b = u(keys[6], (E,))
    s1_w = u(keys[7], (E, E)).T
    s1_b = u(keys[8], (E,))
    s2_w = u(keys[9], (E, E)).T
    s2_b = u(keys[10], (E,))

    # Fused heads: layer-1 concatenated, layer-2 block-diagonal, padded E -> Ep.
    W1 = jnp.zeros((E, 2 * Ep), jnp.float32)
    W1 = W1.at[:, 0:E].set(mu1_w)
    W1 = W1.at[:, Ep:Ep + E].set(s1_w)
    b1 = jnp.zeros((1, 2 * Ep), jnp.float32)
    b1 = b1.at[0, 0:E].set(mu1_b)
    b1 = b1.at[0, Ep:Ep + E].set(s1_b)
    W2 = jnp.zeros((2 * Ep, 2 * Ep), jnp.float32)
    W2 = W2.at[0:E, 0:E].set(mu1_w)       # mu head applies mu_fc1 AGAIN (ref quirk)
    W2 = W2.at[Ep:Ep + E, Ep:Ep + E].set(s2_w)
    b2 = jnp.zeros((1, 2 * Ep), jnp.float32)
    b2 = b2.at[0, 0:E].set(mu1_b)
    b2 = b2.at[0, Ep:Ep + E].set(s2_b)

    return {
        # nn.Embedding default init is N(0, 1)
        "embed": jax.random.normal(keys[0], (vocab_size, E), jnp.float32),
        "lstm_fused": lstm_fused,
        "heads_fused": (W1.astype(jnp.bfloat16), b1,
                        W2.astype(jnp.bfloat16), b2),
        # Kept for module fidelity (unused in forward, like the reference):
        "mu_fc2_w": mu2_w, "mu_fc2_b": mu2_b,
    }


if __name__ == "__main__":
    VOCAB, E, B, T = 50, 32, 2, 8
    key = jax.random.PRNGKey(0)
    k_params, k_tok = jax.random.split(key)

    params = init_params(k_params, VOCAB, E)
    sentence = jax.random.randint(k_tok, (B, T), 0, VOCAB, dtype=jnp.int32)
    # pack_padded_sequence default requires lengths sorted decreasing (> 0).
    lengths = jnp.array([8, 5], dtype=jnp.int32)

    fwd = jax.jit(embed_align_encoder_forward)
    mus, sigmas = fwd(params, sentence, lengths)
    jax.block_until_ready((mus, sigmas))

    assert mus.shape == (B, T, E) and sigmas.shape == (B, T, E)
    assert bool(jnp.all(jnp.isfinite(mus))) and bool(jnp.all(sigmas > 0))
    print("KERNEL_OK")
</pallas_src>

<mosaic_0001>
module attributes {stable_mosaic.version = 11 : i64} {
  func.func @_bilstm_kernel(%arg0: i32, %arg1: i32, %arg2: memref<8x8x128xbf16, #tpu.memory_space<vmem>>, %arg3: memref<8x1xi32, #tpu.memory_space<vmem>>, %arg4: memref<128x512xbf16, #tpu.memory_space<vmem>>, %arg5: memref<128x512xbf16, #tpu.memory_space<vmem>>, %arg6: memref<1x512xf32, #tpu.memory_space<vmem>>, %arg7: memref<8x8x128xf32, #tpu.memory_space<vmem>>, %arg8: memref<8x8x512xf32, #tpu.memory_space<vmem>>, %arg9: memref<8x128xf32, #tpu.memory_space<vmem>>, %arg10: memref<8x128xf32, #tpu.memory_space<vmem>>) attributes {dimension_semantics = [#tpu.dimension_semantics<parallel>, #tpu.dimension_semantics<arbitrary>], iteration_bounds = array<i64: 1, 1>, scalar_prefetch = 0 : i64, scratch_operands = 3 : i64, tpu.core_type = #tpu.core_type<tc>, window_params = [{transform_indices = @transform_0, window_bounds = array<i64: 8, 8, 128>}, {transform_indices = @transform_1, window_bounds = array<i64: 8, 1>}, {pipeline_mode = #tpu.pipeline_mode<synchronous>, transform_indices = @transform_2, window_bounds = array<i64: 128, 512>}, {pipeline_mode = #tpu.pipeline_mode<synchronous>, transform_indices = @transform_3, window_bounds = array<i64: 128, 512>}, {pipeline_mode = #tpu.pipeline_mode<synchronous>, transform_indices = @transform_4, window_bounds = array<i64: 1, 512>}, {transform_indices = @transform_5, window_bounds = array<i64: 8, 8, 128>}]} {
    %c0_i32 = arith.constant 0 : i32
    %0 = arith.cmpi eq, %arg1, %c0_i32 : i32
    %1 = arith.extui %0 : i1 to i32
    %c0_i32_0 = arith.constant 0 : i32
    %2 = arith.cmpi ne, %1, %c0_i32_0 : i32
    scf.if %2 {
      %cst_96 = arith.constant 0.000000e+00 : f32
      %403 = vector.broadcast %cst_96 : f32 to vector<8x128xf32>
      %c0_97 = arith.constant 0 : index
      %c0_98 = arith.constant 0 : index
      %404 = vector.load %arg9[%c0_97, %c0_98] : memref<8x128xf32, #tpu.memory_space<vmem>>, vector<8x128xf32>
      tpu.vector_store %arg9[%c0_97, %c0_98], %403 {strides = array<i32>} : memref<8x128xf32, #tpu.memory_space<vmem>>, vector<8x128xf32>,
      %cst_99 = arith.constant 0.000000e+00 : f32
      %405 = vector.broadcast %cst_99 : f32 to vector<8x128xf32>
      %c0_100 = arith.constant 0 : index
      %c0_101 = arith.constant 0 : index
      %406 = vector.load %arg10[%c0_100, %c0_101] : memref<8x128xf32, #tpu.memory_space<vmem>>, vector<8x128xf32>
      tpu.vector_store %arg10[%c0_100, %c0_101], %405 {strides = array<i32>} : memref<8x128xf32, #tpu.memory_space<vmem>>, vector<8x128xf32>,
    } else {
    }
    %c0 = arith.constant 0 : index
    %c0_1 = arith.constant 0 : index
    %c0_2 = arith.constant 0 : index
    %3 = vector.load %arg2[%c0, %c0_1, %c0_2] : memref<8x8x128xbf16, #tpu.memory_space<vmem>>, vector<8x8x128xbf16>
    %4 = vector.shape_cast %3 : vector<8x8x128xbf16> to vector<64x128xbf16>
    %c0_3 = arith.constant 0 : index
    %c0_4 = arith.constant 0 : index
    %5 = vector.load %arg4[%c0_3, %c0_4] : memref<128x512xbf16, #tpu.memory_space<vmem>>, vector<128x512xbf16>
    %cst = arith.constant dense<0.000000e+00> : vector<64x512xf32>
    %6 = tpu.matmul %4, %5, %cst {dimension_numbers = #tpu.dot_dimension_numbers<[1], [0], [0], [1], [0, 0, 1, 1], [], []>} : vector<64x128xbf16>, vector<128x512xbf16>, vector<64x512xf32> -> vector<64x512xf32>
    %c0_5 = arith.constant 0 : index
    %c0_6 = arith.constant 0 : index
    %7 = vector.load %arg6[%c0_5, %c0_6] : memref<1x512xf32, #tpu.memory_space<vmem>>, vector<1x512xf32>
    %8 = vector.broadcast %7 : vector<1x512xf32> to vector<64x512xf32>
    %9 = arith.addf %6, %8 : vector<64x512xf32>
    %10 = vector.shape_cast %9 : vector<64x512xf32> to vector<8x8x512xf32>
    %c0_7 = arith.constant 0 : index
    %c0_8 = arith.constant 0 : index
    %c0_9 = arith.constant 0 : index
    %11 = vector.load %arg8[%c0_7, %c0_8, %c0_9] : memref<8x8x512xf32, #tpu.memory_space<vmem>>, vector<8x8x512xf32>
    tpu.vector_store %arg8[%c0_7, %c0_8, %c0_9], %10 {strides = array<i32>} : memref<8x8x512xf32, #tpu.memory_space<vmem>>, vector<8x8x512xf32>,
    %c0_10 = arith.constant 0 : index
    %c0_11 = arith.constant 0 : index
    %12 = vector.load %arg5[%c0_10, %c0_11] : memref<128x512xbf16, #tpu.memory_space<vmem>>, vector<128x512xbf16>
    %c0_12 = arith.constant 0 : index
    %c0_13 = arith.constant 0 : index
    %13 = vector.load %arg3[%c0_12, %c0_13] : memref<8x1xi32, #tpu.memory_space<vmem>>, vector<8x1xi32>
    %c8_i32 = arith.constant 8 : i32
    %14 = arith.muli %arg1, %c8_i32 : i32
    %c0_14 = arith.constant 0 : index
    %c0_15 = arith.constant 0 : index
    %15 = vector.load %arg9[%c0_14, %c0_15] : memref<8x128xf32, #tpu.memory_space<vmem>>, vector<8x128xf32>
    %c0_16 = arith.constant 0 : index
    %c0_17 = arith.constant 0 : index
    %16 = vector.load %arg10[%c0_16, %c0_17] : memref<8x128xf32, #tpu.memory_space<vmem>>, vector<8x128xf32>
    %c0_i32_18 = arith.constant 0 : i32
    %17 = arith.index_cast %c0_i32_18 : i32 to index
    %c0_19 = arith.constant 0 : index
    %c0_20 = arith.constant 0 : index
    %18 = vector.load %arg8[%17, %c0_19, %c0_20] : memref<8x8x512xf32, #tpu.memory_space<vmem>>, vector<1x8x512xf32>
    %19 = vector.shape_cast %18 : vector<1x8x512xf32> to vector<8x512xf32>
    %20 = arith.truncf %15 : vector<8x128xf32> to vector<8x128xbf16>
    %cst_21 = arith.constant dense<0.000000e+00> : vector<8x512xf32>
    %21 = tpu.matmul %20, %12, %cst_21 {dimension_numbers = #tpu.dot_dimension_numbers<[1], [0], [0], [1], [0, 0, 1, 1], [], []>} : vector<8x128xbf16>, vector<128x512xbf16>, vector<8x512xf32> -> vector<8x512xf32>
    %22 = arith.addf %19, %21 : vector<8x512xf32>
    %23 = vector.extract_strided_slice %22 {offsets = [0, 0], sizes = [8, 128], strides = [1, 1]} : vector<8x512xf32> to vector<8x128xf32>
    %24 = arith.negf %23 : vector<8x128xf32>
    %25 = math.exp %24 : vector<8x128xf32>
    %cst_22 = arith.constant 1.000000e+00 : f32
    %26 = vector.broadcast %cst_22 : f32 to vector<8x128xf32>
    %27 = arith.addf %26, %25 : vector<8x128xf32>
    %28 = arith.divf %26, %27 : vector<8x128xf32>
    %29 = vector.extract_strided_slice %22 {offsets = [0, 128], sizes = [8, 128], strides = [1, 1]} : vector<8x512xf32> to vector<8x128xf32>
    %30 = arith.negf %29 : vector<8x128xf32>
    %31 = math.exp %30 : vector<8x128xf32>
    %cst_23 = arith.constant 1.000000e+00 : f32
    %32 = vector.broadcast %cst_23 : f32 to vector<8x128xf32>
    %33 = arith.addf %32, %31 : vector<8x128xf32>
    %34 = arith.divf %32, %33 : vector<8x128xf32>
    %35 = vector.extract_strided_slice %22 {offsets = [0, 256], sizes = [8, 128], strides = [1, 1]} : vector<8x512xf32> to vector<8x128xf32>
    %36 = math.tanh %35 : vector<8x128xf32>
    %37 = vector.extract_strided_slice %22 {offsets = [0, 384], sizes = [8, 128], strides = [1, 1]} : vector<8x512xf32> to vector<8x128xf32>
    %38 = arith.negf %37 : vector<8x128xf32>
    %39 = math.exp %38 : vector<8x128xf32>
    %cst_24 = arith.constant 1.000000e+00 : f32
    %40 = vector.broadcast %cst_24 : f32 to vector<8x128xf32>
    %41 = arith.addf %40, %39 : vector<8x128xf32>
    %42 = arith.divf %40, %41 : vector<8x128xf32>
    %43 = arith.mulf %34, %16 : vector<8x128xf32>
    %44 = arith.mulf %28, %36 : vector<8x128xf32>
    %45 = arith.addf %43, %44 : vector<8x128xf32>
    %46 = math.tanh %45 : vector<8x128xf32>
    %47 = arith.mulf %42, %46 : vector<8x128xf32>
    %48 = arith.addi %14, %c0_i32_18 : i32
    %49 = vector.broadcast %48 : i32 to vector<8x1xi32>
    %50 = arith.cmpi slt, %49, %13 : vector<8x1xi32>
    %51 = vector.shape_cast %50 : vector<8x1xi1> to vector<8x1xi1>
    %52 = vector.broadcast %51 : vector<8x1xi1> to vector<8x128xi1>
    %53 = arith.select %52, %47, %15 : vector<8x128xi1>, vector<8x128xf32>
    %54 = vector.shape_cast %50 : vector<8x1xi1> to vector<8x1xi1>
    %55 = vector.broadcast %54 : vector<8x1xi1> to vector<8x128xi1>
    %56 = arith.select %55, %45, %16 : vector<8x128xi1>, vector<8x128xf32>
    %cst_25 = arith.constant 0.000000e+00 : f32
    %57 = vector.shape_cast %50 : vector<8x1xi1> to vector<8x1xi1>
    %58 = vector.broadcast %57 : vector<8x1xi1> to vector<8x128xi1>
    %59 = vector.broadcast %cst_25 : f32 to vector<8x128xf32>
    %60 = arith.select %58, %47, %59 : vector<8x128xi1>, vector<8x128xf32>
    %61 = arith.index_cast %c0_i32_18 : i32 to index
    %c0_26 = arith.constant 0 : index
    %c0_27 = arith.constant 0 : index
    %62 = vector.load %arg7[%61, %c0_26, %c0_27] : memref<8x8x128xf32, #tpu.memory_space<vmem>>, vector<1x8x128xf32>
    %63 = vector.shape_cast %62 : vector<1x8x128xf32> to vector<8x128xf32>
    %64 = vector.shape_cast %60 : vector<8x128xf32> to vector<1x8x128xf32>
    tpu.vector_store %arg7[%61, %c0_26, %c0_27], %64 {strides = array<i32>} : memref<8x8x128xf32, #tpu.memory_space<vmem>>, vector<1x8x128xf32>,
    %c1_i32 = arith.constant 1 : i32
    %65 = arith.index_cast %c1_i32 : i32 to index
    %c0_28 = arith.constant 0 : index
    %c0_29 = arith.constant 0 : index
    %66 = vector.load %arg8[%65, %c0_28, %c0_29] : memref<8x8x512xf32, #tpu.memory_space<vmem>>, vector<1x8x512xf32>
    %67 = vector.shape_cast %66 : vector<1x8x512xf32> to vector<8x512xf32>
    %68 = arith.truncf %53 : vector<8x128xf32> to vector<8x128xbf16>
    %cst_30 = arith.constant dense<0.000000e+00> : vector<8x512xf32>
    %69 = tpu.matmul %68, %12, %cst_30 {dimension_numbers = #tpu.dot_dimension_numbers<[1], [0], [0], [1], [0, 0, 1, 1], [], []>} : vector<8x128xbf16>, vector<128x512xbf16>, vector<8x512xf32> -> vector<8x512xf32>
    %70 = arith.addf %67, %69 : vector<8x512xf32>
    %71 = vector.extract_strided_slice %70 {offsets = [0, 0], sizes = [8, 128], strides = [1, 1]} : vector<8x512xf32> to vector<8x128xf32>
    %72 = arith.negf %71 : vector<8x128xf32>
    %73 = math.exp %72 : vector<8x128xf32>
    %cst_31 = arith.constant 1.000000e+00 : f32
    %74 = vector.broadcast %cst_31 : f32 to vector<8x128xf32>
    %75 = arith.addf %74, %73 : vector<8x128xf32>
    %76 = arith.divf %74, %75 : vector<8x128xf32>
    %77 = vector.extract_strided_slice %70 {offsets = [0, 128], sizes = [8, 128], strides = [1, 1]} : vector<8x512xf32> to vector<8x128xf32>
    %78 = arith.negf %77 : vector<8x128xf32>
    %79 = math.exp %78 : vector<8x128xf32>
    %cst_32 = arith.constant 1.000000e+00 : f32
    %80 = vector.broadcast %cst_32 : f32 to vector<8x128xf32>
    %81 = arith.addf %80, %79 : vector<8x128xf32>
    %82 = arith.divf %80, %81 : vector<8x128xf32>
    %83 = vector.extract_strided_slice %70 {offsets = [0, 256], sizes = [8, 128], strides = [1, 1]} : vector<8x512xf32> to vector<8x128xf32>
    %84 = math.tanh %83 : vector<8x128xf32>
    %85 = vector.extract_strided_slice %70 {offsets = [0, 384], sizes = [8, 128], strides = [1, 1]} : vector<8x512xf32> to vector<8x128xf32>
    %86 = arith.negf %85 : vector<8x128xf32>
    %87 = math.exp %86 : vector<8x128xf32>
    %cst_33 = arith.constant 1.000000e+00 : f32
    %88 = vector.broadcast %cst_33 : f32 to vector<8x128xf32>
    %89 = arith.addf %88, %87 : vector<8x128xf32>
    %90 = arith.divf %88, %89 : vector<8x128xf32>
    %91 = arith.mulf %82, %56 : vector<8x128xf32>
    %92 = arith.mulf %76, %84 : vector<8x128xf32>
    %93 = arith.addf %91, %92 : vector<8x128xf32>
    %94 = math.tanh %93 : vector<8x128xf32>
    %95 = arith.mulf %90, %94 : vector<8x128xf32>
    %96 = arith.addi %14, %c1_i32 : i32
    %97 = vector.broadcast %96 : i32 to vector<8x1xi32>
    %98 = arith.cmpi slt, %97, %13 : vector<8x1xi32>
    %99 = vector.shape_cast %98 : vector<8x1xi1> to vector<8x1xi1>
    %100 = vector.broadcast %99 : vector<8x1xi1> to vector<8x128xi1>
    %101 = arith.select %100, %95, %53 : vector<8x128xi1>, vector<8x128xf32>
    %102 = vector.shape_cast %98 : vector<8x1xi1> to vector<8x1xi1>
    %103 = vector.broadcast %102 : vector<8x1xi1> to vector<8x128xi1>
    %104 = arith.select %103, %93, %56 : vector<8x128xi1>, vector<8x128xf32>
    %cst_34 = arith.constant 0.000000e+00 : f32
    %105 = vector.shape_cast %98 : vector<8x1xi1> to vector<8x1xi1>
    %106 = vector.broadcast %105 : vector<8x1xi1> to vector<8x128xi1>
    %107 = vector.broadcast %cst_34 : f32 to vector<8x128xf32>
    %108 = arith.select %106, %95, %107 : vector<8x128xi1>, vector<8x128xf32>
    %109 = arith.index_cast %c1_i32 : i32 to index
    %c0_35 = arith.constant 0 : index
    %c0_36 = arith.constant 0 : index
    %110 = vector.load %arg7[%109, %c0_35, %c0_36] : memref<8x8x128xf32, #tpu.memory_space<vmem>>, vector<1x8x128xf32>
    %111 = vector.shape_cast %110 : vector<1x8x128xf32> to vector<8x128xf32>
    %112 = vector.shape_cast %108 : vector<8x128xf32> to vector<1x8x128xf32>
    tpu.vector_store %arg7[%109, %c0_35, %c0_36], %112 {strides = array<i32>} : memref<8x8x128xf32, #tpu.memory_space<vmem>>, vector<1x8x128xf32>,
    %c2_i32 = arith.constant 2 : i32
    %113 = arith.index_cast %c2_i32 : i32 to index
    %c0_37 = arith.constant 0 : index
    %c0_38 = arith.constant 0 : index
    %114 = vector.load %arg8[%113, %c0_37, %c0_38] : memref<8x8x512xf32, #tpu.memory_space<vmem>>, vector<1x8x512xf32>
    %115 = vector.shape_cast %114 : vector<1x8x512xf32> to vector<8x512xf32>
    %116 = arith.truncf %101 : vector<8x128xf32> to vector<8x128xbf16>
    %cst_39 = arith.constant dense<0.000000e+00> : vector<8x512xf32>
    %117 = tpu.matmul %116, %12, %cst_39 {dimension_numbers = #tpu.dot_dimension_numbers<[1], [0], [0], [1], [0, 0, 1, 1], [], []>} : vector<8x128xbf16>, vector<128x512xbf16>, vector<8x512xf32> -> vector<8x512xf32>
    %118 = arith.addf %115, %117 : vector<8x512xf32>
    %119 = vector.extract_strided_slice %118 {offsets = [0, 0], sizes = [8, 128], strides = [1, 1]} : vector<8x512xf32> to vector<8x128xf32>
    %120 = arith.negf %119 : vector<8x128xf32>
    %121 = math.exp %120 : vector<8x128xf32>
    %cst_40 = arith.constant 1.000000e+00 : f32
    %122 = vector.broadcast %cst_40 : f32 to vector<8x128xf32>
    %123 = arith.addf %122, %121 : vector<8x128xf32>
    %124 = arith.divf %122, %123 : vector<8x128xf32>
    %125 = vector.extract_strided_slice %118 {offsets = [0, 128], sizes = [8, 128], strides = [1, 1]} : vector<8x512xf32> to vector<8x128xf32>
    %126 = arith.negf %125 : vector<8x128xf32>
    %127 = math.exp %126 : vector<8x128xf32>
    %cst_41 = arith.constant 1.000000e+00 : f32
    %128 = vector.broadcast %cst_41 : f32 to vector<8x128xf32>
    %129 = arith.addf %128, %127 : vector<8x128xf32>
    %130 = arith.divf %128, %129 : vector<8x128xf32>
    %131 = vector.extract_strided_slice %118 {offsets = [0, 256], sizes = [8, 128], strides = [1, 1]} : vector<8x512xf32> to vector<8x128xf32>
    %132 = math.tanh %131 : vector<8x128xf32>
    %133 = vector.extract_strided_slice %118 {offsets = [0, 384], sizes = [8, 128], strides = [1, 1]} : vector<8x512xf32> to vector<8x128xf32>
    %134 = arith.negf %133 : vector<8x128xf32>
    %135 = math.exp %134 : vector<8x128xf32>
    %cst_42 = arith.constant 1.000000e+00 : f32
    %136 = vector.broadcast %cst_42 : f32 to vector<8x128xf32>
    %137 = arith.addf %136, %135 : vector<8x128xf32>
    %138 = arith.divf %136, %137 : vector<8x128xf32>
    %139 = arith.mulf %130, %104 : vector<8x128xf32>
    %140 = arith.mulf %124, %132 : vector<8x128xf32>
    %141 = arith.addf %139, %140 : vector<8x128xf32>
    %142 = math.tanh %141 : vector<8x128xf32>
    %143 = arith.mulf %138, %142 : vector<8x128xf32>
    %144 = arith.addi %14, %c2_i32 : i32
    %145 = vector.broadcast %144 : i32 to vector<8x1xi32>
    %146 = arith.cmpi slt, %145, %13 : vector<8x1xi32>
    %147 = vector.shape_cast %146 : vector<8x1xi1> to vector<8x1xi1>
    %148 = vector.broadcast %147 : vector<8x1xi1> to vector<8x128xi1>
    %149 = arith.select %148, %143, %101 : vector<8x128xi1>, vector<8x128xf32>
    %150 = vector.shape_cast %146 : vector<8x1xi1> to vector<8x1xi1>
    %151 = vector.broadcast %150 : vector<8x1xi1> to vector<8x128xi1>
    %152 = arith.select %151, %141, %104 : vector<8x128xi1>, vector<8x128xf32>
    %cst_43 = arith.constant 0.000000e+00 : f32
    %153 = vector.shape_cast %146 : vector<8x1xi1> to vector<8x1xi1>
    %154 = vector.broadcast %153 : vector<8x1xi1> to vector<8x128xi1>
    %155 = vector.broadcast %cst_43 : f32 to vector<8x128xf32>
    %156 = arith.select %154, %143, %155 : vector<8x128xi1>, vector<8x128xf32>
    %157 = arith.index_cast %c2_i32 : i32 to index
    %c0_44 = arith.constant 0 : index
    %c0_45 = arith.constant 0 : index
    %158 = vector.load %arg7[%157, %c0_44, %c0_45] : memref<8x8x128xf32, #tpu.memory_space<vmem>>, vector<1x8x128xf32>
    %159 = vector.shape_cast %158 : vector<1x8x128xf32> to vector<8x128xf32>
    %160 = vector.shape_cast %156 : vector<8x128xf32> to vector<1x8x128xf32>
    tpu.vector_store %arg7[%157, %c0_44, %c0_45], %160 {strides = array<i32>} : memref<8x8x128xf32, #tpu.memory_space<vmem>>, vector<1x8x128xf32>,
    %c3_i32 = arith.constant 3 : i32
    %161 = arith.index_cast %c3_i32 : i32 to index
    %c0_46 = arith.constant 0 : index
    %c0_47 = arith.constant 0 : index
    %162 = vector.load %arg8[%161, %c0_46, %c0_47] : memref<8x8x512xf32, #tpu.memory_space<vmem>>, vector<1x8x512xf32>
    %163 = vector.shape_cast %162 : vector<1x8x512xf32> to vector<8x512xf32>
    %164 = arith.truncf %149 : vector<8x128xf32> to vector<8x128xbf16>
    %cst_48 = arith.constant dense<0.000000e+00> : vector<8x512xf32>
    %165 = tpu.matmul %164, %12, %cst_48 {dimension_numbers = #tpu.dot_dimension_numbers<[1], [0], [0], [1], [0, 0, 1, 1], [], []>} : vector<8x128xbf16>, vector<128x512xbf16>, vector<8x512xf32> -> vector<8x512xf32>
    %166 = arith.addf %163, %165 : vector<8x512xf32>
    %167 = vector.extract_strided_slice %166 {offsets = [0, 0], sizes = [8, 128], strides = [1, 1]} : vector<8x512xf32> to vector<8x128xf32>
    %168 = arith.negf %167 : vector<8x128xf32>
    %169 = math.exp %168 : vector<8x128xf32>
    %cst_49 = arith.constant 1.000000e+00 : f32
    %170 = vector.broadcast %cst_49 : f32 to vector<8x128xf32>
    %171 = arith.addf %170, %169 : vector<8x128xf32>
    %172 = arith.divf %170, %171 : vector<8x128xf32>
    %173 = vector.extract_strided_slice %166 {offsets = [0, 128], sizes = [8, 128], strides = [1, 1]} : vector<8x512xf32> to vector<8x128xf32>
    %174 = arith.negf %173 : vector<8x128xf32>
    %175 = math.exp %174 : vector<8x128xf32>
    %cst_50 = arith.constant 1.000000e+00 : f32
    %176 = vector.broadcast %cst_50 : f32 to vector<8x128xf32>
    %177 = arith.addf %176, %175 : vector<8x128xf32>
    %178 = arith.divf %176, %177 : vector<8x128xf32>
    %179 = vector.extract_strided_slice %166 {offsets = [0, 256], sizes = [8, 128], strides = [1, 1]} : vector<8x512xf32> to vector<8x128xf32>
    %180 = math.tanh %179 : vector<8x128xf32>
    %181 = vector.extract_strided_slice %166 {offsets = [0, 384], sizes = [8, 128], strides = [1, 1]} : vector<8x512xf32> to vector<8x128xf32>
    %182 = arith.negf %181 : vector<8x128xf32>
    %183 = math.exp %182 : vector<8x128xf32>
    %cst_51 = arith.constant 1.000000e+00 : f32
    %184 = vector.broadcast %cst_51 : f32 to vector<8x128xf32>
    %185 = arith.addf %184, %183 : vector<8x128xf32>
    %186 = arith.divf %184, %185 : vector<8x128xf32>
    %187 = arith.mulf %178, %152 : vector<8x128xf32>
    %188 = arith.mulf %172, %180 : vector<8x128xf32>
    %189 = arith.addf %187, %188 : vector<8x128xf32>
    %190 = math.tanh %189 : vector<8x128xf32>
    %191 = arith.mulf %186, %190 : vector<8x128xf32>
    %192 = arith.addi %14, %c3_i32 : i32
    %193 = vector.broadcast %192 : i32 to vector<8x1xi32>
    %194 = arith.cmpi slt, %193, %13 : vector<8x1xi32>
    %195 = vector.shape_cast %194 : vector<8x1xi1> to vector<8x1xi1>
    %196 = vector.broadcast %195 : vector<8x1xi1> to vector<8x128xi1>
    %197 = arith.select %196, %191, %149 : vector<8x128xi1>, vector<8x128xf32>
    %198 = vector.shape_cast %194 : vector<8x1xi1> to vector<8x1xi1>
    %199 = vector.broadcast %198 : vector<8x1xi1> to vector<8x128xi1>
    %200 = arith.select %199, %189, %152 : vector<8x128xi1>, vector<8x128xf32>
    %cst_52 = arith.constant 0.000000e+00 : f32
    %201 = vector.shape_cast %194 : vector<8x1xi1> to vector<8x1xi1>
    %202 = vector.broadcast %201 : vector<8x1xi1> to vector<8x128xi1>
    %203 = vector.broadcast %cst_52 : f32 to vector<8x128xf32>
    %204 = arith.select %202, %191, %203 : vector<8x128xi1>, vector<8x128xf32>
    %205 = arith.index_cast %c3_i32 : i32 to index
    %c0_53 = arith.constant 0 : index
    %c0_54 = arith.constant 0 : index
    %206 = vector.load %arg7[%205, %c0_53, %c0_54] : memref<8x8x128xf32, #tpu.memory_space<vmem>>, vector<1x8x128xf32>
    %207 = vector.shape_cast %206 : vector<1x8x128xf32> to vector<8x128xf32>
    %208 = vector.shape_cast %204 : vector<8x128xf32> to vector<1x8x128xf32>
    tpu.vector_store %arg7[%205, %c0_53, %c0_54], %208 {strides = array<i32>} : memref<8x8x128xf32, #tpu.memory_space<vmem>>, vector<1x8x128xf32>,
    %c4_i32 = arith.constant 4 : i32
    %209 = arith.index_cast %c4_i32 : i32 to index
    %c0_55 = arith.constant 0 : index
    %c0_56 = arith.constant 0 : index
    %210 = vector.load %arg8[%209, %c0_55, %c0_56] : memref<8x8x512xf32, #tpu.memory_space<vmem>>, vector<1x8x512xf32>
    %211 = vector.shape_cast %210 : vector<1x8x512xf32> to vector<8x512xf32>
    %212 = arith.truncf %197 : vector<8x128xf32> to vector<8x128xbf16>
    %cst_57 = arith.constant dense<0.000000e+00> : vector<8x512xf32>
    %213 = tpu.matmul %212, %12, %cst_57 {dimension_numbers = #tpu.dot_dimension_numbers<[1], [0], [0], [1], [0, 0, 1, 1], [], []>} : vector<8x128xbf16>, vector<128x512xbf16>, vector<8x512xf32> -> vector<8x512xf32>
    %214 = arith.addf %211, %213 : vector<8x512xf32>
    %215 = vector.extract_strided_slice %214 {offsets = [0, 0], sizes = [8, 128], strides = [1, 1]} : vector<8x512xf32> to vector<8x128xf32>
    %216 = arith.negf %215 : vector<8x128xf32>
    %217 = math.exp %216 : vector<8x128xf32>
    %cst_58 = arith.constant 1.000000e+00 : f32
    %218 = vector.broadcast %cst_58 : f32 to vector<8x128xf32>
    %219 = arith.addf %218, %217 : vector<8x128xf32>
    %220 = arith.divf %218, %219 : vector<8x128xf32>
    %221 = vector.extract_strided_slice %214 {offsets = [0, 128], sizes = [8, 128], strides = [1, 1]} : vector<8x512xf32> to vector<8x128xf32>
    %222 = arith.negf %221 : vector<8x128xf32>
    %223 = math.exp %222 : vector<8x128xf32>
    %cst_59 = arith.constant 1.000000e+00 : f32
    %224 = vector.broadcast %cst_59 : f32 to vector<8x128xf32>
    %225 = arith.addf %224, %223 : vector<8x128xf32>
    %226 = arith.divf %224, %225 : vector<8x128xf32>
    %227 = vector.extract_strided_slice %214 {offsets = [0, 256], sizes = [8, 128], strides = [1, 1]} : vector<8x512xf32> to vector<8x128xf32>
    %228 = math.tanh %227 : vector<8x128xf32>
    %229 = vector.extract_strided_slice %214 {offsets = [0, 384], sizes = [8, 128], strides = [1, 1]} : vector<8x512xf32> to vector<8x128xf32>
    %230 = arith.negf %229 : vector<8x128xf32>
    %231 = math.exp %230 : vector<8x128xf32>
    %cst_60 = arith.constant 1.000000e+00 : f32
    %232 = vector.broadcast %cst_60 : f32 to vector<8x128xf32>
    %233 = arith.addf %232, %231 : vector<8x128xf32>
    %234 = arith.divf %232, %233 : vector<8x128xf32>
    %235 = arith.mulf %226, %200 : vector<8x128xf32>
    %236 = arith.mulf %220, %228 : vector<8x128xf32>
    %237 = arith.addf %235, %236 : vector<8x128xf32>
    %238 = math.tanh %237 : vector<8x128xf32>
    %239 = arith.mulf %234, %238 : vector<8x128xf32>
    %240 = arith.addi %14, %c4_i32 : i32
    %241 = vector.broadcast %240 : i32 to vector<8x1xi32>
    %242 = arith.cmpi slt, %241, %13 : vector<8x1xi32>
    %243 = vector.shape_cast %242 : vector<8x1xi1> to vector<8x1xi1>
    %244 = vector.broadcast %243 : vector<8x1xi1> to vector<8x128xi1>
    %245 = arith.select %244, %239, %197 : vector<8x128xi1>, vector<8x128xf32>
    %246 = vector.shape_cast %242 : vector<8x1xi1> to vector<8x1xi1>
    %247 = vector.broadcast %246 : vector<8x1xi1> to vector<8x128xi1>
    %248 = arith.select %247, %237, %200 : vector<8x128xi1>, vector<8x128xf32>
    %cst_61 = arith.constant 0.000000e+00 : f32
    %249 = vector.shape_cast %242 : vector<8x1xi1> to vector<8x1xi1>
    %250 = vector.broadcast %249 : vector<8x1xi1> to vector<8x128xi1>
    %251 = vector.broadcast %cst_61 : f32 to vector<8x128xf32>
    %252 = arith.select %250, %239, %251 : vector<8x128xi1>, vector<8x128xf32>
    %253 = arith.index_cast %c4_i32 : i32 to index
    %c0_62 = arith.constant 0 : index
    %c0_63 = arith.constant 0 : index
    %254 = vector.load %arg7[%253, %c0_62, %c0_63] : memref<8x8x128xf32, #tpu.memory_space<vmem>>, vector<1x8x128xf32>
    %255 = vector.shape_cast %254 : vector<1x8x128xf32> to vector<8x128xf32>
    %256 = vector.shape_cast %252 : vector<8x128xf32> to vector<1x8x128xf32>
    tpu.vector_store %arg7[%253, %c0_62, %c0_63], %256 {strides = array<i32>} : memref<8x8x128xf32, #tpu.memory_space<vmem>>, vector<1x8x128xf32>,
    %c5_i32 = arith.constant 5 : i32
    %257 = arith.index_cast %c5_i32 : i32 to index
    %c0_64 = arith.constant 0 : index
    %c0_65 = arith.constant 0 : index
    %258 = vector.load %arg8[%257, %c0_64, %c0_65] : memref<8x8x512xf32, #tpu.memory_space<vmem>>, vector<1x8x512xf32>
    %259 = vector.shape_cast %258 : vector<1x8x512xf32> to vector<8x512xf32>
    %260 = arith.truncf %245 : vector<8x128xf32> to vector<8x128xbf16>
    %cst_66 = arith.constant dense<0.000000e+00> : vector<8x512xf32>
    %261 = tpu.matmul %260, %12, %cst_66 {dimension_numbers = #tpu.dot_dimension_numbers<[1], [0], [0], [1], [0, 0, 1, 1], [], []>} : vector<8x128xbf16>, vector<128x512xbf16>, vector<8x512xf32> -> vector<8x512xf32>
    %262 = arith.addf %259, %261 : vector<8x512xf32>
    %263 = vector.extract_strided_slice %262 {offsets = [0, 0], sizes = [8, 128], strides = [1, 1]} : vector<8x512xf32> to vector<8x128xf32>
    %264 = arith.negf %263 : vector<8x128xf32>
    %265 = math.exp %264 : vector<8x128xf32>
    %cst_67 = arith.constant 1.000000e+00 : f32
    %266 = vector.broadcast %cst_67 : f32 to vector<8x128xf32>
    %267 = arith.addf %266, %265 : vector<8x128xf32>
    %268 = arith.divf %266, %267 : vector<8x128xf32>
    %269 = vector.extract_strided_slice %262 {offsets = [0, 128], sizes = [8, 128], strides = [1, 1]} : vector<8x512xf32> to vector<8x128xf32>
    %270 = arith.negf %269 : vector<8x128xf32>
    %271 = math.exp %270 : vector<8x128xf32>
    %cst_68 = arith.constant 1.000000e+00 : f32
    %272 = vector.broadcast %cst_68 : f32 to vector<8x128xf32>
    %273 = arith.addf %272, %271 : vector<8x128xf32>
    %274 = arith.divf %272, %273 : vector<8x128xf32>
    %275 = vector.extract_strided_slice %262 {offsets = [0, 256], sizes = [8, 128], strides = [1, 1]} : vector<8x512xf32> to vector<8x128xf32>
    %276 = math.tanh %275 : vector<8x128xf32>
    %277 = vector.extract_strided_slice %262 {offsets = [0, 384], sizes = [8, 128], strides = [1, 1]} : vector<8x512xf32> to vector<8x128xf32>
    %278 = arith.negf %277 : vector<8x128xf32>
    %279 = math.exp %278 : vector<8x128xf32>
    %cst_69 = arith.constant 1.000000e+00 : f32
    %280 = vector.broadcast %cst_69 : f32 to vector<8x128xf32>
    %281 = arith.addf %280, %279 : vector<8x128xf32>
    %282 = arith.divf %280, %281 : vector<8x128xf32>
    %283 = arith.mulf %274, %248 : vector<8x128xf32>
    %284 = arith.mulf %268, %276 : vector<8x128xf32>
    %285 = arith.addf %283, %284 : vector<8x128xf32>
    %286 = math.tanh %285 : vector<8x128xf32>
    %287 = arith.mulf %282, %286 : vector<8x128xf32>
    %288 = arith.addi %14, %c5_i32 : i32
    %289 = vector.broadcast %288 : i32 to vector<8x1xi32>
    %290 = arith.cmpi slt, %289, %13 : vector<8x1xi32>
    %291 = vector.shape_cast %290 : vector<8x1xi1> to vector<8x1xi1>
    %292 = vector.broadcast %291 : vector<8x1xi1> to vector<8x128xi1>
    %293 = arith.select %292, %287, %245 : vector<8x128xi1>, vector<8x128xf32>
    %294 = vector.shape_cast %290 : vector<8x1xi1> to vector<8x1xi1>
    %295 = vector.broadcast %294 : vector<8x1xi1> to vector<8x128xi1>
    %296 = arith.select %295, %285, %248 : vector<8x128xi1>, vector<8x128xf32>
    %cst_70 = arith.constant 0.000000e+00 : f32
    %297 = vector.shape_cast %290 : vector<8x1xi1> to vector<8x1xi1>
    %298 = vector.broadcast %297 : vector<8x1xi1> to vector<8x128xi1>
    %299 = vector.broadcast %cst_70 : f32 to vector<8x128xf32>
    %300 = arith.select %298, %287, %299 : vector<8x128xi1>, vector<8x128xf32>
    %301 = arith.index_cast %c5_i32 : i32 to index
    %c0_71 = arith.constant 0 : index
    %c0_72 = arith.constant 0 : index
    %302 = vector.load %arg7[%301, %c0_71, %c0_72] : memref<8x8x128xf32, #tpu.memory_space<vmem>>, vector<1x8x128xf32>
    %303 = vector.shape_cast %302 : vector<1x8x128xf32> to vector<8x128xf32>
    %304 = vector.shape_cast %300 : vector<8x128xf32> to vector<1x8x128xf32>
    tpu.vector_store %arg7[%301, %c0_71, %c0_72], %304 {strides = array<i32>} : memref<8x8x128xf32, #tpu.memory_space<vmem>>, vector<1x8x128xf32>,
    %c6_i32 = arith.constant 6 : i32
    %305 = arith.index_cast %c6_i32 : i32 to index
    %c0_73 = arith.constant 0 : index
    %c0_74 = arith.constant 0 : index
    %306 = vector.load %arg8[%305, %c0_73, %c0_74] : memref<8x8x512xf32, #tpu.memory_space<vmem>>, vector<1x8x512xf32>
    %307 = vector.shape_cast %306 : vector<1x8x512xf32> to vector<8x512xf32>
    %308 = arith.truncf %293 : vector<8x128xf32> to vector<8x128xbf16>
    %cst_75 = arith.constant dense<0.000000e+00> : vector<8x512xf32>
    %309 = tpu.matmul %308, %12, %cst_75 {dimension_numbers = #tpu.dot_dimension_numbers<[1], [0], [0], [1], [0, 0, 1, 1], [], []>} : vector<8x128xbf16>, vector<128x512xbf16>, vector<8x512xf32> -> vector<8x512xf32>
    %310 = arith.addf %307, %309 : vector<8x512xf32>
    %311 = vector.extract_strided_slice %310 {offsets = [0, 0], sizes = [8, 128], strides = [1, 1]} : vector<8x512xf32> to vector<8x128xf32>
    %312 = arith.negf %311 : vector<8x128xf32>
    %313 = math.exp %312 : vector<8x128xf32>
    %cst_76 = arith.constant 1.000000e+00 : f32
    %314 = vector.broadcast %cst_76 : f32 to vector<8x128xf32>
    %315 = arith.addf %314, %313 : vector<8x128xf32>
    %316 = arith.divf %314, %315 : vector<8x128xf32>
    %317 = vector.extract_strided_slice %310 {offsets = [0, 128], sizes = [8, 128], strides = [1, 1]} : vector<8x512xf32> to vector<8x128xf32>
    %318 = arith.negf %317 : vector<8x128xf32>
    %319 = math.exp %318 : vector<8x128xf32>
    %cst_77 = arith.constant 1.000000e+00 : f32
    %320 = vector.broadcast %cst_77 : f32 to vector<8x128xf32>
    %321 = arith.addf %320, %319 : vector<8x128xf32>
    %322 = arith.divf %320, %321 : vector<8x128xf32>
    %323 = vector.extract_strided_slice %310 {offsets = [0, 256], sizes = [8, 128], strides = [1, 1]} : vector<8x512xf32> to vector<8x128xf32>
    %324 = math.tanh %323 : vector<8x128xf32>
    %325 = vector.extract_strided_slice %310 {offsets = [0, 384], sizes = [8, 128], strides = [1, 1]} : vector<8x512xf32> to vector<8x128xf32>
    %326 = arith.negf %325 : vector<8x128xf32>
    %327 = math.exp %326 : vector<8x128xf32>
    %cst_78 = arith.constant 1.000000e+00 : f32
    %328 = vector.broadcast %cst_78 : f32 to vector<8x128xf32>
    %329 = arith.addf %328, %327 : vector<8x128xf32>
    %330 = arith.divf %328, %329 : vector<8x128xf32>
    %331 = arith.mulf %322, %296 : vector<8x128xf32>
    %332 = arith.mulf %316, %324 : vector<8x128xf32>
    %333 = arith.addf %331, %332 : vector<8x128xf32>
    %334 = math.tanh %333 : vector<8x128xf32>
    %335 = arith.mulf %330, %334 : vector<8x128xf32>
    %336 = arith.addi %14, %c6_i32 : i32
    %337 = vector.broadcast %336 : i32 to vector<8x1xi32>
    %338 = arith.cmpi slt, %337, %13 : vector<8x1xi32>
    %339 = vector.shape_cast %338 : vector<8x1xi1> to vector<8x1xi1>
    %340 = vector.broadcast %339 : vector<8x1xi1> to vector<8x128xi1>
    %341 = arith.select %340, %335, %293 : vector<8x128xi1>, vector<8x128xf32>
    %342 = vector.shape_cast %338 : vector<8x1xi1> to vector<8x1xi1>
    %343 = vector.broadcast %342 : vector<8x1xi1> to vector<8x128xi1>
    %344 = arith.select %343, %333, %296 : vector<8x128xi1>, vector<8x128xf32>
    %cst_79 = arith.constant 0.000000e+00 : f32
    %345 = vector.shape_cast %338 : vector<8x1xi1> to vector<8x1xi1>
    %346 = vector.broadcast %345 : vector<8x1xi1> to vector<8x128xi1>
    %347 = vector.broadcast %cst_79 : f32 to vector<8x128xf32>
    %348 = arith.select %346, %335, %347 : vector<8x128xi1>, vector<8x128xf32>
    %349 = arith.index_cast %c6_i32 : i32 to index
    %c0_80 = arith.constant 0 : index
    %c0_81 = arith.constant 0 : index
    %350 = vector.load %arg7[%349, %c0_80, %c0_81] : memref<8x8x128xf32, #tpu.memory_space<vmem>>, vector<1x8x128xf32>
    %351 = vector.shape_cast %350 : vector<1x8x128xf32> to vector<8x128xf32>
    %352 = vector.shape_cast %348 : vector<8x128xf32> to vector<1x8x128xf32>
    tpu.vector_store %arg7[%349, %c0_80, %c0_81], %352 {strides = array<i32>} : memref<8x8x128xf32, #tpu.memory_space<vmem>>, vector<1x8x128xf32>,
    %c7_i32 = arith.constant 7 : i32
    %353 = arith.index_cast %c7_i32 : i32 to index
    %c0_82 = arith.constant 0 : index
    %c0_83 = arith.constant 0 : index
    %354 = vector.load %arg8[%353, %c0_82, %c0_83] : memref<8x8x512xf32, #tpu.memory_space<vmem>>, vector<1x8x512xf32>
    %355 = vector.shape_cast %354 : vector<1x8x512xf32> to vector<8x512xf32>
    %356 = arith.truncf %341 : vector<8x128xf32> to vector<8x128xbf16>
    %cst_84 = arith.constant dense<0.000000e+00> : vector<8x512xf32>
    %357 = tpu.matmul %356, %12, %cst_84 {dimension_numbers = #tpu.dot_dimension_numbers<[1], [0], [0], [1], [0, 0, 1, 1], [], []>} : vector<8x128xbf16>, vector<128x512xbf16>, vector<8x512xf32> -> vector<8x512xf32>
    %358 = arith.addf %355, %357 : vector<8x512xf32>
    %359 = vector.extract_strided_slice %358 {offsets = [0, 0], sizes = [8, 128], strides = [1, 1]} : vector<8x512xf32> to vector<8x128xf32>
    %360 = arith.negf %359 : vector<8x128xf32>
    %361 = math.exp %360 : vector<8x128xf32>
    %cst_85 = arith.constant 1.000000e+00 : f32
    %362 = vector.broadcast %cst_85 : f32 to vector<8x128xf32>
    %363 = arith.addf %362, %361 : vector<8x128xf32>
    %364 = arith.divf %362, %363 : vector<8x128xf32>
    %365 = vector.extract_strided_slice %358 {offsets = [0, 128], sizes = [8, 128], strides = [1, 1]} : vector<8x512xf32> to vector<8x128xf32>
    %366 = arith.negf %365 : vector<8x128xf32>
    %367 = math.exp %366 : vector<8x128xf32>
    %cst_86 = arith.constant 1.000000e+00 : f32
    %368 = vector.broadcast %cst_86 : f32 to vector<8x128xf32>
    %369 = arith.addf %368, %367 : vector<8x128xf32>
    %370 = arith.divf %368, %369 : vector<8x128xf32>
    %371 = vector.extract_strided_slice %358 {offsets = [0, 256], sizes = [8, 128], strides = [1, 1]} : vector<8x512xf32> to vector<8x128xf32>
    %372 = math.tanh %371 : vector<8x128xf32>
    %373 = vector.extract_strided_slice %358 {offsets = [0, 384], sizes = [8, 128], strides = [1, 1]} : vector<8x512xf32> to vector<8x128xf32>
    %374 = arith.negf %373 : vector<8x128xf32>
    %375 = math.exp %374 : vector<8x128xf32>
    %cst_87 = arith.constant 1.000000e+00 : f32
    %376 = vector.broadcast %cst_87 : f32 to vector<8x128xf32>
    %377 = arith.addf %376, %375 : vector<8x128xf32>
    %378 = arith.divf %376, %377 : vector<8x128xf32>
    %379 = arith.mulf %370, %344 : vector<8x128xf32>
    %380 = arith.mulf %364, %372 : vector<8x128xf32>
    %381 = arith.addf %379, %380 : vector<8x128xf32>
    %382 = math.tanh %381 : vector<8x128xf32>
    %383 = arith.mulf %378, %382 : vector<8x128xf32>
    %384 = arith.addi %14, %c7_i32 : i32
    %385 = vector.broadcast %384 : i32 to vector<8x1xi32>
    %386 = arith.cmpi slt, %385, %13 : vector<8x1xi32>
    %387 = vector.shape_cast %386 : vector<8x1xi1> to vector<8x1xi1>
    %388 = vector.broadcast %387 : vector<8x1xi1> to vector<8x128xi1>
    %389 = arith.select %388, %383, %341 : vector<8x128xi1>, vector<8x128xf32>
    %390 = vector.shape_cast %386 : vector<8x1xi1> to vector<8x1xi1>
    %391 = vector.broadcast %390 : vector<8x1xi1> to vector<8x128xi1>
    %392 = arith.select %391, %381, %344 : vector<8x128xi1>, vector<8x128xf32>
    %cst_88 = arith.constant 0.000000e+00 : f32
    %393 = vector.shape_cast %386 : vector<8x1xi1> to vector<8x1xi1>
    %394 = vector.broadcast %393 : vector<8x1xi1> to vector<8x128xi1>
    %395 = vector.broadcast %cst_88 : f32 to vector<8x128xf32>
    %396 = arith.select %394, %383, %395 : vector<8x128xi1>, vector<8x128xf32>
    %397 = arith.index_cast %c7_i32 : i32 to index
    %c0_89 = arith.constant 0 : index
    %c0_90 = arith.constant 0 : index
    %398 = vector.load %arg7[%397, %c0_89, %c0_90] : memref<8x8x128xf32, #tpu.memory_space<vmem>>, vector<1x8x128xf32>
    %399 = vector.shape_cast %398 : vector<1x8x128xf32> to vector<8x128xf32>
    %400 = vector.shape_cast %396 : vector<8x128xf32> to vector<1x8x128xf32>
    tpu.vector_store %arg7[%397, %c0_89, %c0_90], %400 {strides = array<i32>} : memref<8x8x128xf32, #tpu.memory_space<vmem>>, vector<1x8x128xf32>,
    %c8_i32_91 = arith.constant 8 : i32
    %c0_92 = arith.constant 0 : index
    %c0_93 = arith.constant 0 : index
    %401 = vector.load %arg9[%c0_92, %c0_93] : memref<8x128xf32, #tpu.memory_space<vmem>>, vector<8x128xf32>
    tpu.vector_store %arg9[%c0_92, %c0_93], %389 {strides = array<i32>} : memref<8x128xf32, #tpu.memory_space<vmem>>, vector<8x128xf32>,
    %c0_94 = arith.constant 0 : index
    %c0_95 = arith.constant 0 : index
    %402 = vector.load %arg10[%c0_94, %c0_95] : memref<8x128xf32, #tpu.memory_space<vmem>>, vector<8x128xf32>
    tpu.vector_store %arg10[%c0_94, %c0_95], %392 {strides = array<i32>} : memref<8x128xf32, #tpu.memory_space<vmem>>, vector<8x128xf32>,
    return
  }
  func.func @transform_0(%arg0: i32, %arg1: i32) -> (i32, i32, i32) {
    %c0_i32 = arith.constant 0 : i32
    %c0_i32_0 = arith.constant 0 : i32
    return %arg1, %arg0, %c0_i32 : i32, i32, i32
  }
  func.func @transform_1(%arg0: i32, %arg1: i32) -> (i32, i32) {
    %c0_i32 = arith.constant 0 : i32
    %c0_i32_0 = arith.constant 0 : i32
    return %arg0, %c0_i32 : i32, i32
  }
  func.func @transform_2(%arg0: i32, %arg1: i32) -> (i32, i32) {
    %c0_i32 = arith.constant 0 : i32
    %c0_i32_0 = arith.constant 0 : i32
    %c0_i32_1 = arith.constant 0 : i32
    return %c0_i32, %c0_i32_0 : i32, i32
  }
  func.func @transform_3(%arg0: i32, %arg1: i32) -> (i32, i32) {
    %c0_i32 = arith.constant 0 : i32
    %c0_i32_0 = arith.constant 0 : i32
    %c0_i32_1 = arith.constant 0 : i32
    return %c0_i32, %c0_i32_0 : i32, i32
  }
  func.func @transform_4(%arg0: i32, %arg1: i32) -> (i32, i32) {
    %c0_i32 = arith.constant 0 : i32
    %c0_i32_0 = arith.constant 0 : i32
    %c0_i32_1 = arith.constant 0 : i32
    return %c0_i32, %c0_i32_0 : i32, i32
  }
  func.func @transform_5(%arg0: i32, %arg1: i32) -> (i32, i32, i32) {
    %c0_i32 = arith.constant 0 : i32
    %c0_i32_0 = arith.constant 0 : i32
    return %arg1, %arg0, %c0_i32 : i32, i32, i32
  }
}

module attributes {stable_mosaic.version = 11 : i64} {
  func.func @_heads_kernel(%arg0: i32, %arg1: memref<16x32xbf16, #tpu.memory_space<vmem>>, %arg2: memref<32x128xbf16, #tpu.memory_space<vmem>>, %arg3: memref<1x128xf32, #tpu.memory_space<vmem>>, %arg4: memref<128x128xbf16, #tpu.memory_space<vmem>>, %arg5: memref<1x128xf32, #tpu.memory_space<vmem>>, %arg6: memref<16x128xf32, #tpu.memory_space<vmem>>) attributes {dimension_semantics = [#tpu.dimension_semantics<parallel>], iteration_bounds = array<i64: 1>, scalar_prefetch = 0 : i64, scratch_operands = 0 : i64, tpu.core_type = #tpu.core_type<tc>, window_params = [{transform_indices = @transform_0, window_bounds = array<i64: 16, 32>}, {pipeline_mode = #tpu.pipeline_mode<synchronous>, transform_indices = @transform_1, window_bounds = array<i64: 32, 128>}, {pipeline_mode = #tpu.pipeline_mode<synchronous>, transform_indices = @transform_2, window_bounds = array<i64: 1, 128>}, {pipeline_mode = #tpu.pipeline_mode<synchronous>, transform_indices = @transform_3, window_bounds = array<i64: 128, 128>}, {pipeline_mode = #tpu.pipeline_mode<synchronous>, transform_indices = @transform_4, window_bounds = array<i64: 1, 128>}, {transform_indices = @transform_5, window_bounds = array<i64: 16, 128>}]} {
    %c0 = arith.constant 0 : index
    %c0_0 = arith.constant 0 : index
    %0 = vector.load %arg1[%c0, %c0_0] : memref<16x32xbf16, #tpu.memory_space<vmem>>, vector<16x32xbf16>
    %c0_1 = arith.constant 0 : index
    %c0_2 = arith.constant 0 : index
    %1 = vector.load %arg2[%c0_1, %c0_2] : memref<32x128xbf16, #tpu.memory_space<vmem>>, vector<32x128xbf16>
    %cst = arith.constant dense<0.000000e+00> : vector<16x128xf32>
    %2 = tpu.matmul %0, %1, %cst {dimension_numbers = #tpu.dot_dimension_numbers<[1], [0], [0], [1], [0, 0, 1, 1], [], []>} : vector<16x32xbf16>, vector<32x128xbf16>, vector<16x128xf32> -> vector<16x128xf32>
    %c0_3 = arith.constant 0 : index
    %c0_4 = arith.constant 0 : index
    %3 = vector.load %arg3[%c0_3, %c0_4] : memref<1x128xf32, #tpu.memory_space<vmem>>, vector<1x128xf32>
    %4 = vector.broadcast %3 : vector<1x128xf32> to vector<16x128xf32>
    %5 = arith.addf %2, %4 : vector<16x128xf32>
    %cst_5 = arith.constant 0.000000e+00 : f32
    %6 = vector.broadcast %cst_5 : f32 to vector<16x128xf32>
    %7 = arith.maximumf %5, %6 : vector<16x128xf32>
    %8 = arith.truncf %7 : vector<16x128xf32> to vector<16x128xbf16>
    %c0_6 = arith.constant 0 : index
    %c0_7 = arith.constant 0 : index
    %9 = vector.load %arg4[%c0_6, %c0_7] : memref<128x128xbf16, #tpu.memory_space<vmem>>, vector<128x128xbf16>
    %cst_8 = arith.constant dense<0.000000e+00> : vector<16x128xf32>
    %10 = tpu.matmul %8, %9, %cst_8 {dimension_numbers = #tpu.dot_dimension_numbers<[1], [0], [0], [1], [0, 0, 1, 1], [], []>} : vector<16x128xbf16>, vector<128x128xbf16>, vector<16x128xf32> -> vector<16x128xf32>
    %c0_9 = arith.constant 0 : index
    %c0_10 = arith.constant 0 : index
    %11 = vector.load %arg5[%c0_9, %c0_10] : memref<1x128xf32, #tpu.memory_space<vmem>>, vector<1x128xf32>
    %12 = vector.broadcast %11 : vector<1x128xf32> to vector<16x128xf32>
    %13 = arith.addf %10, %12 : vector<16x128xf32>
    %14 = vector.extract_strided_slice %13 {offsets = [0, 64], sizes = [16, 64], strides = [1, 1]} : vector<16x128xf32> to vector<16x64xf32>
    %cst_11 = arith.constant 2.000000e+01 : f32
    %15 = vector.broadcast %cst_11 : f32 to vector<16x64xf32>
    %16 = arith.cmpf ogt, %14, %15 : vector<16x64xf32>
    %cst_12 = arith.constant 2.000000e+01 : f32
    %17 = vector.broadcast %cst_12 : f32 to vector<16x64xf32>
    %18 = arith.minimumf %14, %17 : vector<16x64xf32>
    %19 = math.exp %18 : vector<16x64xf32>
    %20 = math.log1p %19 : vector<16x64xf32>
    %21 = arith.select %16, %14, %20 : vector<16x64xi1>, vector<16x64xf32>
    %22 = vector.extract_strided_slice %13 {offsets = [0, 0], sizes = [16, 64], strides = [1, 1]} : vector<16x128xf32> to vector<16x64xf32>
    %23 = tpu.concatenate %22, %21 in 1 : vector<16x64xf32>, vector<16x64xf32> -> vector<16x128xf32>
    %c0_13 = arith.constant 0 : index
    %c0_14 = arith.constant 0 : index
    %24 = vector.load %arg6[%c0_13, %c0_14] : memref<16x128xf32, #tpu.memory_space<vmem>>, vector<16x128xf32>
    tpu.vector_store %arg6[%c0_13, %c0_14], %23 {strides = array<i32>} : memref<16x128xf32, #tpu.memory_space<vmem>>, vector<16x128xf32>,
    return
  }
  func.func @transform_0(%arg0: i32) -> (i32, i32) {
    %c0_i32 = arith.constant 0 : i32
    %c0_i32_0 = arith.constant 0 : i32
    return %arg0, %c0_i32 : i32, i32
  }
  func.func @transform_1(%arg0: i32) -> (i32, i32) {
    %c0_i32 = arith.constant 0 : i32
    %c0_i32_0 = arith.constant 0 : i32
    %c0_i32_1 = arith.constant 0 : i32
    return %c0_i32, %c0_i32_0 : i32, i32
  }
  func.func @transform_2(%arg0: i32) -> (i32, i32) {
    %c0_i32 = arith.constant 0 : i32
    %c0_i32_0 = arith.constant 0 : i32
    %c0_i32_1 = arith.constant 0 : i32
    return %c0_i32, %c0_i32_0 : i32, i32
  }
  func.func @transform_3(%arg0: i32) -> (i32, i32) {
    %c0_i32 = arith.constant 0 : i32
    %c0_i32_0 = arith.constant 0 : i32
    %c0_i32_1 = arith.constant 0 : i32
    return %c0_i32, %c0_i32_0 : i32, i32
  }
  func.func @transform_4(%arg0: i32) -> (i32, i32) {
    %c0_i32 = arith.constant 0 : i32
    %c0_i32_0 = arith.constant 0 : i32
    %c0_i32_1 = arith.constant 0 : i32
    return %c0_i32, %c0_i32_0 : i32, i32
  }
  func.func @transform_5(%arg0: i32) -> (i32, i32) {
    %c0_i32 = arith.constant 0 : i32
    %c0_i32_0 = arith.constant 0 : i32
    return %arg0, %c0_i32 : i32, i32
  }
}

</mosaic_0001>

<bundles_post_ra>
// kernel: embed_align_encoder_forward.3
= control target key start
LH: loop header
LB: loop body
LE: loop exit
PB: predicated region body
PF: predicated region fallthrough
CT: control target
= control target key end

     0   :  { %v323_v0 = vmov 0.0   ;;  %vm324_vm0 = vmmov 0   ;;  %vm51_vm1 = vcmask 261120   ;;  %vm239_vm3 = vcmask 523264   ;;  %s400_s1 = inlined_call_operand.vmem [shape: bf16[32,128], index: 1, kind: input, shape index: {}]   ;;  %s401_s3 = inlined_call_operand.vmem [shape: bf16[128,128], index: 3, kind: input, shape index: {}]   ;;  %s402_s0 = inlined_call_operand.vmem [shape: bf16[16,32], index: 0, kind: input, shape index: {}]   ;;  %s403_s2 = inlined_call_operand.vmem [shape: f32[1,128], index: 2, kind: input, shape index: {}]   ;;  %s404_s4 = inlined_call_operand.vmem [shape: f32[1,128], index: 4, kind: input, shape index: {}]   ;;  %s405_s5 = inlined_call_operand.vmem [shape: f32[16,128], index: 5, kind: output, shape index: {}]  }
   0x1   :  { %274 = vmatprep.subr.bf16.mxu0 %v323_v0  ;;  %v304_v1 = vld [vmem:[%s400_s1 + $0x8] sm:$0xff]   ;;  %278 = vmatprep.mubr.msk.bf16.mxu0 %vm324_vm0, %v323_v0  ;;  %v305_v2 = vld [vmem:[%s400_s1] sm:$0xff]   ;;  %v307_v3 = vld [vmem:[%s401_s3 + $0x38] sm:$0xff]  }
   0x2   :  { %282 = vmatprep.subr.bf16.mxu1 %v323_v0  ;;  %298 = vmatprep.mubr.msk.bf16.mxu1 %vm324_vm0, %v323_v0  ;;  %v306_v4 = vld [vmem:[%s402_s0] sm:$0xff]   ;;  %v308_v5 = vld [vmem:[%s401_s3 + $0x30] sm:$0xff]   ;;  %v309_v6 = vld [vmem:[%s401_s3 + $0x28] sm:$0xff]  }
   0x3   :  { %275 = vmatpush3.bf16.msra.mxu0 %v304_v1  ;;  %283 = vmatpush3.bf16.msra.mxu1 %v307_v3  ;;  %v310_v7 = vld [vmem:[%s401_s3 + $0x20] sm:$0xff]   ;;  %v311_v8 = vld [vmem:[%s401_s3 + $0x18] sm:$0xff]   ;;  %v312_v9 = vld [vmem:[%s401_s3 + $0x10] sm:$0xff]  }
   0x4   :  { %276 = vmatprep.subr.bf16.mxu0 %v323_v0  ;;  %284 = vmatprep.subr.bf16.mxu1 %v323_v0  ;;  %v313_v10 = vld [vmem:[%s401_s3 + $0x8] sm:$0xff]   ;;  %v314_v11 = vld [vmem:[%s401_s3] sm:$0xff]  }
   0x5   :  { %v248_v12 = vld [vmem:[%s403_s2] ss:$0 sm:$0xff] }
   0x6   :  { %v253_v22 = vld [vmem:[%s404_s4] ss:$0 sm:$0xff] }
   0x7   :  { %277 = vmatpush3.bf16.msra.mxu0 %v305_v2  ;;  %285 = vmatpush3.bf16.msra.mxu1 %v308_v5 }
   0x8   :  { %286 = vmatprep.subr.bf16.mxu1 %v323_v0 }
   0xa   :  { %279 = vmatmul.mubr.msk.bf16.vlgmr.msra.gmra.mxu0 %vm51_vm1, %v306_v4 }
   0xb   :  { %287 = vmatpush3.bf16.msra.mxu1 %v309_v6 }
   0xc   :  { %288 = vmatprep.subr.bf16.mxu1 %v323_v0 }
   0xf   :  { %289 = vmatpush3.bf16.msra.mxu1 %v310_v7 }
  0x10   :  { %290 = vmatprep.subr.bf16.mxu1 %v323_v0 }
  0x13   :  { %291 = vmatpush3.bf16.msra.mxu1 %v311_v8 }
  0x14   :  { %292 = vmatprep.subr.bf16.mxu1 %v323_v0 }
  0x17   :  { %293 = vmatpush3.bf16.msra.mxu1 %v312_v9 }
  0x18   :  { %294 = vmatprep.subr.bf16.mxu1 %v323_v0 }
  0x1b   :  { %295 = vmatpush3.bf16.msra.mxu1 %v313_v10 }
  0x1c   :  { %296 = vmatprep.subr.bf16.mxu1 %v323_v0 }
  0x1f   :  { %297 = vmatpush3.bf16.msra.mxu1 %v314_v11 }
  0xca   :  { %v89_v13 = vpop.f32.mrf.mxu0 }
  0xcb   :  { %v90_v15 = vadd.f32 %v248_v12, %v89_v13 }
  0xcc   :  { %v280_v14 = vpop.f32.mrf.mxu0 }
  0xcd   :  { %v96_v19 = vmax.f32 %v90_v15, 0.0 }
  0xce   :  { %v92_v16 = vpop.f32.mrf.mxu0 }
  0xcf   :  { %v93_v17 = vadd.f32 %v248_v12, %v92_v16 }
  0xd0   :  { %v281_v18 = vpop.f32.mrf.mxu0 }
  0xd1   :  { %v97_v20 = vmax.f32 %v93_v17, 0.0 }
  0xd3   :  { %v98_v21 = vpack.c.bf16 %v97_v20, %v96_v19 }
  0xd5   :  { %299 = vmatmul.mubr.bf16.vlgmr.msra.gmra.mxu1 %v98_v21 }
 0x195   :  { %v204_v23 = vpop.f32.mrf.mxu1 }
 0x196   :  { %v205_v24 = vadd.f32 %v253_v22, %v204_v23 }
 0x197   :  { %v300_v25 = vpop.f32.mrf.mxu1 }
 0x198   :  { %v213_v26 = vmin.f32 %v205_v24, 20.0  ;;  %vm211_vm4 = vcmp.gt.f32.partialorder %v205_v24, 20.0 }
 0x199   :  { %v207_v27 = vpop.f32.mrf.mxu1 }
 0x19a   :  { %v215_v28 = vmul.f32 1.442695, %v213_v26  ;;  %v208_v29 = vadd.f32 %v253_v22, %v207_v27 }
 0x19b   :  { %v301_v30 = vpop.f32.mrf.mxu1 }
 0x19c   :  { %315 = vpow2.f32 %v215_v28  ;;  %v214_v31 = vmin.f32 %v208_v29, 20.0  ;;  %vm212_vm6 = vcmp.gt.f32.partialorder %v208_v29, 20.0 }
 0x19e   :  { %v217_v32 = vmul.f32 1.442695, %v214_v31 }
 0x1a0   :  { %317 = vpow2.f32 %v217_v32 }
 0x1a9   :  { %v316_v33 = vpop.eup %315 }
 0x1aa   :  { %v219_v34 = vadd.f32 1.0, %v316_v33  ;;  %v222_v37 = vmul.f32 -0.5, %v316_v33  ;;  %v225_v40 = vand.u32 2147483647, %v316_v33 }
 0x1ac   :  { %319 = vlog2.f32 %v219_v34  ;;  %v223_v38 = vadd.f32 1.0, %v222_v37  ;;  %vm226_vm2 = vcmp.lt.f32.partialorder %v225_v40, 0.0004427343 }
 0x1ad   :  { %v318_v35 = vpop.eup %317 }
 0x1ae   :  { %v228_v36 = vadd.f32 1.0, %v318_v35  ;;  %v231_v39 = vmul.f32 -0.5, %v318_v35  ;;  %v224_v43 = vmul.f32 %v316_v33, %v223_v38  ;;  %v234_v45 = vand.u32 2147483647, %v318_v35 }
 0x1b0   :  { %321 = vlog2.f32 %v228_v36  ;;  %v232_v44 = vadd.f32 1.0, %v231_v39  ;;  %vm235_vm5 = vcmp.lt.f32.partialorder %v234_v45, 0.0004427343 }
 0x1b2   :  { %v233_v51 = vmul.f32 %v318_v35, %v232_v44 }
 0x1b9   :  { %v320_v41 = vpop.eup %319 }
 0x1ba   :  { %v221_v42 = vmul.f32 0.6931472, %v320_v41 }
 0x1bc   :  { %v227_v46 = vsel %vm226_vm2, %v224_v43, %v221_v42 }
 0x1bd   :  { %v322_v47 = vpop.eup %321  ;;  %v237_v48 = vsel %vm211_vm4, %v205_v24, %v227_v46 }
 0x1be   :  { %v240_v49 = vsel %vm239_vm3, %v205_v24, %v237_v48  ;;  %v230_v50 = vmul.f32 0.6931472, %v322_v47 }
 0x1bf   :  { %242 = vst [vmem:[%s405_s5] sm:$0xff] %v240_v49 }
 0x1c0   :  { %v236_v52 = vsel %vm235_vm5, %v233_v51, %v230_v50 }
 0x1c1   :  { %v238_v53 = vsel %vm212_vm6, %v208_v29, %v236_v52 }
 0x1c2   :  { %v241_v54 = vsel %vm239_vm3, %v208_v29, %v238_v53 }
 0x1c3   :  { %243 = vst [vmem:[%s405_s5 + $0x8] sm:$0xff] %v241_v54 }

// kernel: embed_align_encoder_forward.2
= control target key start
LH: loop header
LB: loop body
LE: loop exit
PB: predicated region body
PF: predicated region fallthrough
CT: control target
= control target key end

     0   :  { %10 = vsyncpa [#allocation6], 0  ;;  %s2099_s18 = smov [#allocation5]   ;;  %s2882_s0 = inlined_call_operand.vmem [shape: bf16[8,8,128], index: 0, kind: input, shape index: {}]   ;;  %s2883_s1 = inlined_call_operand.vmem [shape: s32[8,1], index: 1, kind: input, shape index: {}]   ;;  %s2884_s2 = inlined_call_operand.vmem [shape: bf16[128,512], index: 2, kind: input, shape index: {}]   ;;  %s2885_s3 = inlined_call_operand.hbm [shape: bf16[128,512], index: 3, kind: input, shape index: {}]   ;;  %s2886_s4 = inlined_call_operand.vmem [shape: f32[1,512], index: 4, kind: input, shape index: {}]   ;;  %s2887_s5 = inlined_call_operand.vmem [shape: f32[8,8,128], index: 5, kind: output, shape index: {}]  }
   0x1   :  { %s22_s19 = sshll.u32 %s2099_s18, 4  ;;  %s23_s19 = int_to_ptr.vmem [resolvable:$true] %s22_s19 }
   0x2   :  { %s2085_s20 = scalar_lea.vmem %s23_s19, 4096  ;;  %p2090_p1 = scmp.lt.s32.totalorder %s23_s19, %s23_s19 }
   0x3   :  { %p2086_p0 = scmp.ne.s32.totalorder %s23_s19, %s2085_s20  ;;  %p2091_p2 = scmp.lt.s32.totalorder %s2085_s20, %s2085_s20 }
   0x5   :  { %p2092_p3 = por %p2091_p2, %p2090_p1 }
   0x7   :  { %p2093_p4 = pnand %p2092_p3, %p2086_p0 }
   0x9   :  { %2096 = shalt.err (!%p2093_p4)
}
   0xa   :  { %s2100_s21 = smov 256   ;;  %s2101_s22 = smov 16  }
   0xb   :  { %28 = dma.hbm_to_vmem [thread:$0]  %s2885_s3, 4096, %s23_s19, [#allocation6], %s2100_s21, %s2100_s21, %s2101_s22  }
   0xc   :  { %2097 = dma.done.wait [#allocation6], 4096  }
   0xd   :  { %2098 = vsyncadd [#allocation6], 4294963200  ;;  %v2888_v0 = vmov 0   ;;  %v1817_v1 = vld [vmem:[%s2884_s2 + $0xe4] ss:$16 sps:$4 sm:$0xff]   ;;  %v1878_v44 = vld [vmem:[%s2882_s0 + $0x8] sm:$0xff]  }
   0xe   :  { %319 = vmatprep.mubr.bf16.mxu0 %v2888_v0  ;;  %392 = vmatprep.mubr.bf16.mxu1 %v2888_v0  ;;  %v1819_v2 = vld [vmem:[%s2884_s2 + $0xec] ss:$16 sps:$4 sm:$0xff]   ;;  %v1821_v3 = vld [vmem:[%s2884_s2 + $0xe0] ss:$16 sps:$4 sm:$0xff]   ;;  %v1822_v4 = vld [vmem:[%s2884_s2 + $0xe8] ss:$16 sps:$4 sm:$0xff]  }
   0xf   :  { %1815 = vset.pattern.permute.xlu0 %v2888_v0  ;;  %1816 = vset.pattern.permute.xlu1 %v2888_v0  ;;  %v1823_v5 = vld [vmem:[%s2884_s2 + $0xc4] ss:$16 sps:$4 sm:$0xff]   ;;  %v1825_v6 = vld [vmem:[%s2884_s2 + $0xcc] ss:$16 sps:$4 sm:$0xff]   ;;  %v1827_v7 = vld [vmem:[%s2884_s2 + $0xc0] ss:$16 sps:$4 sm:$0xff]  }
  0x10   :  { %287 = vmatprep.subr.bf16.mxu0 %v1817_v1  ;;  %360 = vmatprep.subr.bf16.mxu1 %v1819_v2  ;;  %v1828_v8 = vld [vmem:[%s2884_s2 + $0xc8] ss:$16 sps:$4 sm:$0xff]   ;;  %v1829_v9 = vld [vmem:[%s2884_s2 + $0xa4] ss:$16 sps:$4 sm:$0xff]   ;;  %v1831_v10 = vld [vmem:[%s2884_s2 + $0xac] ss:$16 sps:$4 sm:$0xff]  }
  0x11   :  { %288 = vmatpush1.bf16.msra.mxu0 %v1821_v3  ;;  %361 = vmatpush1.bf16.msra.mxu1 %v1822_v4  ;;  %v1833_v11 = vld [vmem:[%s2884_s2 + $0xa0] ss:$16 sps:$4 sm:$0xff]   ;;  %v1834_v12 = vld [vmem:[%s2884_s2 + $0xa8] ss:$16 sps:$4 sm:$0xff]   ;;  %v1835_v13 = vld [vmem:[%s2884_s2 + $0x84] ss:$16 sps:$4 sm:$0xff]  }
  0x12   :  { %289 = vmatprep.subr.bf16.mxu0 %v1823_v5  ;;  %362 = vmatprep.subr.bf16.mxu1 %v1825_v6  ;;  %v1837_v14 = vld [vmem:[%s2884_s2 + $0x8c] ss:$16 sps:$4 sm:$0xff]   ;;  %v1839_v15 = vld [vmem:[%s2884_s2 + $0x80] ss:$16 sps:$4 sm:$0xff]   ;;  %v1840_v16 = vld [vmem:[%s2884_s2 + $0x88] ss:$16 sps:$4 sm:$0xff]  }
  0x13   :  { %v1841_v17 = vld [vmem:[%s2884_s2 + $0x64] ss:$16 sps:$4 sm:$0xff]   ;;  %v1843_v18 = vld [vmem:[%s2884_s2 + $0x6c] ss:$16 sps:$4 sm:$0xff]   ;;  %v1845_v19 = vld [vmem:[%s2884_s2 + $0x60] ss:$16 sps:$4 sm:$0xff]  }
  0x14   :  { %v1846_v20 = vld [vmem:[%s2884_s2 + $0x68] ss:$16 sps:$4 sm:$0xff]   ;;  %v1847_v21 = vld [vmem:[%s2884_s2 + $0x44] ss:$16 sps:$4 sm:$0xff]   ;;  %v1849_v22 = vld [vmem:[%s2884_s2 + $0x4c] ss:$16 sps:$4 sm:$0xff]  }
  0x15   :  { %290 = vmatpush1.bf16.msra.mxu0 %v1827_v7  ;;  %363 = vmatpush1.bf16.msra.mxu1 %v1828_v8  ;;  %v1851_v23 = vld [vmem:[%s2884_s2 + $0x40] ss:$16 sps:$4 sm:$0xff]   ;;  %v1852_v24 = vld [vmem:[%s2884_s2 + $0x48] ss:$16 sps:$4 sm:$0xff]   ;;  %v1853_v25 = vld [vmem:[%s2884_s2 + $0x24] ss:$16 sps:$4 sm:$0xff]  }
  0x16   :  { %291 = vmatprep.subr.bf16.mxu0 %v1829_v9  ;;  %364 = vmatprep.subr.bf16.mxu1 %v1831_v10  ;;  %v1855_v26 = vld [vmem:[%s2884_s2 + $0x2c] ss:$16 sps:$4 sm:$0xff]   ;;  %v1857_v27 = vld [vmem:[%s2884_s2 + $0x20] ss:$16 sps:$4 sm:$0xff]   ;;  %v1858_v28 = vld [vmem:[%s2884_s2 + $0x28] ss:$16 sps:$4 sm:$0xff]  }
  0x17   :  { %v1859_v29 = vld [vmem:[%s2884_s2 + $0x4] ss:$16 sps:$4 sm:$0xff]   ;;  %v1861_v30 = vld [vmem:[%s2884_s2 + $0xc] ss:$16 sps:$4 sm:$0xff]   ;;  %v1863_v31 = vld [vmem:[%s2884_s2] ss:$16 sps:$4 sm:$0xff]  }
  0x18   :  { %v1864_v32 = vld [vmem:[%s2884_s2 + $0x8] ss:$16 sps:$4 sm:$0xff]   ;;  %v2237_v33 = vld [vmem:[#allocation5 + $0xe4] ss:$16 sps:$4 sm:$0xff]   ;;  %v2239_v34 = vld [vmem:[#allocation5 + $0xec] ss:$16 sps:$4 sm:$0xff]  }
  0x19   :  { %292 = vmatpush1.bf16.msra.mxu0 %v1833_v11  ;;  %365 = vmatpush1.bf16.msra.mxu1 %v1834_v12  ;;  %v1865_v35 = vld [vmem:[%s2882_s0] sm:$0xff]   ;;  %v2246_v37 = vld [vmem:[#allocation5 + $0xe8] ss:$16 sps:$4 sm:$0xff]   ;;  %v2252_v39 = vld [vmem:[#allocation5 + $0xcc] ss:$16 sps:$4 sm:$0xff]   ;;  %v2103_v11 = vmov 0.0|0.0   ;;  %v83_v12 = vlaneseq }
  0x1a   :  { %293 = vmatprep.subr.bf16.mxu0 %v1835_v13  ;;  %366 = vmatprep.subr.bf16.mxu1 %v1837_v14  ;;  %v2244_v36 = vld [vmem:[#allocation5 + $0xe0] ss:$16 sps:$4 sm:$0xff]   ;;  %v2250_v38 = vld [vmem:[#allocation5 + $0xc4] ss:$16 sps:$4 sm:$0xff]   ;;  %v2258_v41 = vld [vmem:[#allocation5 + $0xc8] ss:$16 sps:$4 sm:$0xff]  }
  0x1b   :  { %v2254_v40 = vld [vmem:[#allocation5 + $0xc0] ss:$16 sps:$4 sm:$0xff]   ;;  %v2262_v42 = vld [vmem:[#allocation5 + $0xa4] ss:$16 sps:$4 sm:$0xff]   ;;  %v2264_v43 = vld [vmem:[#allocation5 + $0xac] ss:$16 sps:$4 sm:$0xff]  }
  0x1c   :  { %v2271_v45 = vld [vmem:[#allocation5 + $0xa0] ss:$16 sps:$4 sm:$0xff]   ;;  %v2273_v46 = vld [vmem:[#allocation5 + $0xa8] ss:$16 sps:$4 sm:$0xff]   ;;  %v2277_v47 = vld [vmem:[#allocation5 + $0x84] ss:$16 sps:$4 sm:$0xff]  }
  0x1d   :  { %294 = vmatpush1.bf16.msra.mxu0 %v1839_v15  ;;  %367 = vmatpush1.bf16.msra.mxu1 %v1840_v16  ;;  %v2281_v48 = vld [vmem:[#allocation5 + $0x8c] ss:$16 sps:$4 sm:$0xff]   ;;  %v2283_v49 = vld [vmem:[#allocation5 + $0x80] ss:$16 sps:$4 sm:$0xff]   ;;  %v2285_v50 = vld [vmem:[#allocation5 + $0x88] ss:$16 sps:$4 sm:$0xff]  }
  0x1e   :  { %295 = vmatprep.subr.bf16.mxu0 %v1841_v17  ;;  %368 = vmatprep.subr.bf16.mxu1 %v1843_v18  ;;  %v2289_v51 = vld [vmem:[#allocation5 + $0x64] ss:$16 sps:$4 sm:$0xff]   ;;  %v2293_v52 = vld [vmem:[#allocation5 + $0x6c] ss:$16 sps:$4 sm:$0xff]   ;;  %v2308_v55 = vld [vmem:[#allocation5 + $0x60] ss:$16 sps:$4 sm:$0xff]  }
  0x1f   :  { %v2300_v53 = vld [vmem:[%s2883_s1] sm:$0xff]  ;;  %v1891_v54 = vld [vmem:[%s2882_s0 + $0x10] sm:$0xff]   ;;  %v2310_v56 = vld [vmem:[#allocation5 + $0x68] ss:$16 sps:$4 sm:$0xff]   ;;  %v84_v13 = vshrl.u32 %v83_v12, 7 }
  0x20   :  { %vm1768_vm0 = vcmp.gt.s32.totalorder %v2300_v53, 0  ;;  %v2315_v58 = vld [vmem:[#allocation5 + $0x44] ss:$16 sps:$4 sm:$0xff]   ;;  %v2317_v59 = vld [vmem:[#allocation5 + $0x4c] ss:$16 sps:$4 sm:$0xff]   ;;  %vm1772_vm1 = vcmp.gt.s32.totalorder %v2300_v53, 1 }
  0x21   :  { %296 = vmatpush1.bf16.msra.mxu0 %v1845_v19  ;;  %369 = vmatpush1.bf16.msra.mxu1 %v1846_v20  ;;  %v778_v57 = vsel %vm1768_vm0, 1, %v2888_v0  ;;  %v2322_v60 = vld [vmem:[#allocation5 + $0x40] ss:$16 sps:$4 sm:$0xff]   ;;  %v2324_v61 = vld [vmem:[#allocation5 + $0x48] ss:$16 sps:$4 sm:$0xff]   ;;  %v906_v62 = vsel %vm1772_vm1, 1, %v2888_v0 }
  0x22   :  { %297 = vmatprep.subr.bf16.mxu0 %v1847_v21  ;;  %370 = vmatprep.subr.bf16.mxu1 %v1849_v22  ;;  %v2329_v63 = vld [vmem:[#allocation5 + $0x24] ss:$16 sps:$4 sm:$0xff]   ;;  %v2331_v1 = vld [vmem:[#allocation5 + $0x2c] ss:$16 sps:$4 sm:$0xff]   ;;  %v2340_v3 = vld [vmem:[#allocation5 + $0x20] ss:$16 sps:$4 sm:$0xff]  }
  0x23   :  { %780 = vperm.xlu0 %1815, %v778_v57   ;;  %v1904_v2 = vld [vmem:[%s2882_s0 + $0x18] sm:$0xff]   ;;  %v2346_v5 = vld [vmem:[#allocation5 + $0x4] ss:$16 sps:$4 sm:$0xff]   ;;  %vm1787_vm2 = vcmp.gt.s32.totalorder %v2300_v53, 4  ;;  %v2353_v7 = vld [vmem:[#allocation5] ss:$16 sps:$4 sm:$0xff]  }
  0x24   :  { %v2342_v4 = vld [vmem:[#allocation5 + $0x28] ss:$16 sps:$4 sm:$0xff]   ;;  %v2348_v6 = vld [vmem:[#allocation5 + $0xc] ss:$16 sps:$4 sm:$0xff]   ;;  %v1293_v9 = vsel %vm1787_vm2, 1, %v2888_v0  ;;  %vm1797_vm3 = vcmp.gt.s32.totalorder %v2300_v53, 6 }
  0x25   :  { %298 = vmatpush1.bf16.msra.mxu0 %v1851_v23  ;;  %371 = vmatpush1.bf16.msra.mxu1 %v1852_v24  ;;  %v2355_v8 = vld [vmem:[#allocation5 + $0x8] ss:$16 sps:$4 sm:$0xff]   ;;  %v1551_v10 = vsel %vm1797_vm3, 1, %v2888_v0  ;;  %v93_v14 = vsub.s32 2, %v84_v13  ;;  %v85_v15 = vsub.s32 0, %v84_v13  ;;  %v97_v16 = vsub.s32 3, %v84_v13 }
  0x26   :  { %299 = vmatprep.subr.bf16.mxu0 %v1853_v25  ;;  %372 = vmatprep.subr.bf16.mxu1 %v1855_v26  ;;  %v81_v17 = vld [vmem:[%s2886_s4] sm:$0xf]  ;;  %v89_v21 = vsub.s32 1, %v84_v13  ;;  %vm1777_vm6 = vcmp.gt.s32.totalorder %v2300_v53, 2  ;;  %vm1782_vm7 = vcmp.gt.s32.totalorder %v2300_v53, 3  ;;  %vm1792_vm8 = vcmp.gt.s32.totalorder %v2300_v53, 5 }
  0x27   :  { %908 = vperm.xlu0 %1815, %v906_v62   ;;  %v2409_v20 = vrot.slane %v81_v17, %v93_v14  ;;  %v86_v24 = vrot.slane %v81_v17, %v85_v15  ;;  %v2415_v25 = vrot.slane %v81_v17, %v97_v16  ;;  %vm1802_vm9 = vcmp.gt.s32.totalorder %v2300_v53, 7 }
  0x29   :  { %300 = vmatpush1.bf16.msra.mxu0 %v1857_v27  ;;  %373 = vmatpush1.bf16.msra.mxu1 %v1858_v28  ;;  %v90_v28 = vrot.slane %v81_v17, %v89_v21 }
  0x2a   :  { %301 = vmatprep.subr.bf16.mxu0 %v1859_v29  ;;  %374 = vmatprep.subr.bf16.mxu1 %v1861_v30 }
  0x2b   :  { %1295 = vperm.xlu0 %1815, %v1293_v9  }
  0x2d   :  { %302 = vmatpush1.bf16.msra.mxu0 %v1863_v31  ;;  %375 = vmatpush1.bf16.msra.mxu1 %v1864_v32 }
  0x2e   :  { %666 = vmatprep.subr.bf16.mxu0 %v2237_v33  ;;  %707 = vmatprep.subr.bf16.mxu1 %v2239_v34 }
  0x2f   :  { %1553 = vperm.xlu0 %1815, %v1551_v10  }
  0x30   :  { %320 = vmatmul.mubr.bf16.vlgmr.msra.gmra.mxu0 %v1865_v35  ;;  %393 = vmatmul.mubr.bf16.vlgmr.msra.gmra.mxu1 %v1865_v35 }
  0x31   :  { %667 = vmatpush1.bf16.msra.mxu0 %v2244_v36  ;;  %708 = vmatpush1.bf16.msra.mxu1 %v2246_v37 }
  0x32   :  { %668 = vmatprep.subr.bf16.mxu0 %v2250_v38  ;;  %709 = vmatprep.subr.bf16.mxu1 %v2252_v39 }
  0x33   :  { %329 = vmatprep.mubr.bf16.mxu0 %v2888_v0  ;;  %402 = vmatprep.mubr.bf16.mxu1 %v2888_v0 }
  0x35   :  { %669 = vmatpush1.bf16.msra.mxu0 %v2254_v40  ;;  %710 = vmatpush1.bf16.msra.mxu1 %v2258_v41 }
  0x36   :  { %670 = vmatprep.subr.bf16.mxu0 %v2262_v42  ;;  %711 = vmatprep.subr.bf16.mxu1 %v2264_v43 }
  0x38   :  { %330 = vmatmul.mubr.bf16.gmra.mxu0 %v1878_v44  ;;  %403 = vmatmul.mubr.bf16.gmra.mxu1 %v1878_v44 }
  0x39   :  { %671 = vmatpush1.bf16.msra.mxu0 %v2271_v45  ;;  %712 = vmatpush1.bf16.msra.mxu1 %v2273_v46 }
  0x3a   :  { %672 = vmatprep.subr.bf16.mxu0 %v2277_v47  ;;  %713 = vmatprep.subr.bf16.mxu1 %v2281_v48 }
  0x3b   :  { %339 = vmatprep.mubr.bf16.mxu0 %v2888_v0  ;;  %412 = vmatprep.mubr.bf16.mxu1 %v2888_v0 }
  0x3d   :  { %673 = vmatpush1.bf16.msra.mxu0 %v2283_v49  ;;  %714 = vmatpush1.bf16.msra.mxu1 %v2285_v50 }
  0x3e   :  { %674 = vmatprep.subr.bf16.mxu0 %v2289_v51  ;;  %715 = vmatprep.subr.bf16.mxu1 %v2293_v52 }
  0x40   :  { %340 = vmatmul.mubr.bf16.gmra.mxu0 %v1891_v54  ;;  %413 = vmatmul.mubr.bf16.gmra.mxu1 %v1891_v54 }
  0x41   :  { %675 = vmatpush1.bf16.msra.mxu0 %v2308_v55  ;;  %716 = vmatpush1.bf16.msra.mxu1 %v2310_v56 }
  0x42   :  { %676 = vmatprep.subr.bf16.mxu0 %v2315_v58  ;;  %717 = vmatprep.subr.bf16.mxu1 %v2317_v59 }
  0x43   :  { %349 = vmatprep.mubr.bf16.mxu0 %v2888_v0  ;;  %422 = vmatprep.mubr.bf16.mxu1 %v2888_v0 }
  0x45   :  { %677 = vmatpush1.bf16.msra.mxu0 %v2322_v60  ;;  %718 = vmatpush1.bf16.msra.mxu1 %v2324_v61 }
  0x46   :  { %678 = vmatprep.subr.bf16.mxu0 %v2329_v63  ;;  %719 = vmatprep.subr.bf16.mxu1 %v2331_v1 }
  0x48   :  { %350 = vmatmul.mubr.bf16.gmra.mxu0 %v1904_v2  ;;  %423 = vmatmul.mubr.bf16.gmra.mxu1 %v1904_v2 }
  0x49   :  { %679 = vmatpush1.bf16.msra.mxu0 %v2340_v3  ;;  %720 = vmatpush1.bf16.msra.mxu1 %v2342_v4 }
  0x4a   :  { %680 = vmatprep.subr.bf16.mxu0 %v2346_v5  ;;  %721 = vmatprep.subr.bf16.mxu1 %v2348_v6 }
  0x4b   :  { %698 = vmatprep.mubr.bf16.mxu0 %v2888_v0  ;;  %739 = vmatprep.mubr.bf16.mxu1 %v2888_v0 }
  0x4d   :  { %681 = vmatpush1.bf16.msra.mxu0 %v2353_v7  ;;  %722 = vmatpush1.bf16.msra.mxu1 %v2355_v8 }
  0x4e   :  { %793 = vmatprep.subr.bf16.mxu0 %v2237_v33  ;;  %834 = vmatprep.subr.bf16.mxu1 %v2239_v34 }
  0x50   :  { %699 = vmatmul.mubr.bf16.vlgmr.msra.gmra.mxu0 %v2103_v11  ;;  %740 = vmatmul.mubr.bf16.vlgmr.msra.gmra.mxu1 %v2103_v11 }
  0x51   :  { %794 = vmatpush1.bf16.msra.mxu0 %v2244_v36  ;;  %835 = vmatpush1.bf16.msra.mxu1 %v2246_v37 }
  0x52   :  { %795 = vmatprep.subr.bf16.mxu0 %v2250_v38  ;;  %836 = vmatprep.subr.bf16.mxu1 %v2252_v39 }
  0x53   :  { %825 = vmatprep.mubr.bf16.mxu0 %v2888_v0  ;;  %866 = vmatprep.mubr.bf16.mxu1 %v2888_v0 }
  0x55   :  { %796 = vmatpush1.bf16.msra.mxu0 %v2254_v40  ;;  %837 = vmatpush1.bf16.msra.mxu1 %v2258_v41 }
  0x56   :  { %797 = vmatprep.subr.bf16.mxu0 %v2262_v42  ;;  %838 = vmatprep.subr.bf16.mxu1 %v2264_v43 }
  0x59   :  { %798 = vmatpush1.bf16.msra.mxu0 %v2271_v45  ;;  %839 = vmatpush1.bf16.msra.mxu1 %v2273_v46 }
  0x5a   :  { %799 = vmatprep.subr.bf16.mxu0 %v2277_v47  ;;  %840 = vmatprep.subr.bf16.mxu1 %v2281_v48 }
  0x5d   :  { %800 = vmatpush1.bf16.msra.mxu0 %v2283_v49  ;;  %841 = vmatpush1.bf16.msra.mxu1 %v2285_v50 }
  0x5e   :  { %801 = vmatprep.subr.bf16.mxu0 %v2289_v51  ;;  %842 = vmatprep.subr.bf16.mxu1 %v2293_v52 }
  0x61   :  { %802 = vmatpush1.bf16.msra.mxu0 %v2308_v55  ;;  %843 = vmatpush1.bf16.msra.mxu1 %v2310_v56 }
  0x62   :  { %803 = vmatprep.subr.bf16.mxu0 %v2315_v58  ;;  %844 = vmatprep.subr.bf16.mxu1 %v2317_v59 }
  0x65   :  { %804 = vmatpush1.bf16.msra.mxu0 %v2322_v60  ;;  %845 = vmatpush1.bf16.msra.mxu1 %v2324_v61 }
  0x66   :  { %805 = vmatprep.subr.bf16.mxu0 %v2329_v63  ;;  %846 = vmatprep.subr.bf16.mxu1 %v2331_v1 }
  0x69   :  { %806 = vmatpush1.bf16.msra.mxu0 %v2340_v3  ;;  %847 = vmatpush1.bf16.msra.mxu1 %v2342_v4 }
  0x6a   :  { %807 = vmatprep.subr.bf16.mxu0 %v2346_v5  ;;  %848 = vmatprep.subr.bf16.mxu1 %v2348_v6 }
  0x6d   :  { %808 = vmatpush1.bf16.msra.mxu0 %v2353_v7  ;;  %849 = vmatpush1.bf16.msra.mxu1 %v2355_v8 }
  0x6e   :  { %922 = vmatprep.subr.bf16.mxu0 %v2237_v33  ;;  %963 = vmatprep.subr.bf16.mxu1 %v2239_v34 }
  0xf0   :  { %v2405_v18 = vpop.f32.mrf.mxu0  ;;  %v2407_v19 = vpop.f32.mrf.mxu1 }
  0xf2   :  { %v2411_v22 = vpop.f32.mrf.mxu0  ;;  %v2413_v23 = vpop.f32.mrf.mxu1 }
  0xf4   :  { %v325_v26 = vpop.f32.mrf.mxu0  ;;  %v398_v27 = vpop.f32.mrf.mxu1 }
  0xf5   :  { %v2417_v29 = vadd.f32 %v325_v26, %v86_v24  ;;  %v2420_v30 = vadd.f32 %v398_v27, %v2409_v20 }
  0xf6   :  { %v327_v31 = vpop.f32.mrf.mxu0  ;;  %v400_v32 = vpop.f32.mrf.mxu1 }
  0xf7   :  { %v2422_v35 = vadd.f32 %v327_v31, %v90_v28  ;;  %v2425_v44 = vadd.f32 %v400_v32, %v2415_v25 }
  0xf8   :  { %v331_v54 = vpop.f32.mrf.mxu0  ;;  %v404_v57 = vpop.f32.mrf.mxu1 }
  0xf9   :  { %v2427_v62 = vadd.f32 %v331_v54, %v86_v24  ;;  %v2430_v2 = vadd.f32 %v404_v57, %v2409_v20 }
  0xfa   :  { %v333_v9 = vpop.f32.mrf.mxu0  ;;  %v406_v10 = vpop.f32.mrf.mxu1 }
  0xfb   :  { %2890 = vst [vmem:[#allocation8_spill] sm:$0xff] %v2430_v2  ;;  %v2432_v11 = vadd.f32 %v333_v9, %v90_v28  ;;  %v2435_v12 = vadd.f32 %v406_v10, %v2415_v25 }
  0xfc   :  { %v335_v13 = vpop.f32.mrf.mxu0  ;;  %v408_v14 = vpop.f32.mrf.mxu1 }
  0xfd   :  { %2891 = vst [vmem:[#allocation9_spill] sm:$0xff] %v2435_v12  ;;  %v2437_v15 = vadd.f32 %v335_v13, %v86_v24  ;;  %v2440_v16 = vadd.f32 %v408_v14, %v2409_v20 }
  0xfe   :  { %v337_v17 = vpop.f32.mrf.mxu0  ;;  %v410_v21 = vpop.f32.mrf.mxu1 }
  0xff   :  { %2892 = vst [vmem:[#allocation10_spill] sm:$0xff] %v2437_v15  ;;  %2893 = vst [vmem:[#allocation11_spill] sm:$0xff] %v2440_v16  ;;  %v2442_v26 = vadd.f32 %v337_v17, %v90_v28  ;;  %v2445_v27 = vadd.f32 %v410_v21, %v2415_v25 }
 0x100   :  { %v341_v31 = vpop.f32.mrf.mxu0  ;;  %v414_v32 = vpop.f32.mrf.mxu1 }
 0x101   :  { %2894 = vst [vmem:[#allocation12_spill] sm:$0xff] %v2442_v26  ;;  %2895 = vst [vmem:[#allocation13_spill] sm:$0xff] %v2445_v27  ;;  %v2447_v54 = vadd.f32 %v341_v31, %v86_v24  ;;  %v2450_v57 = vadd.f32 %v414_v32, %v2409_v20 }
 0x102   :  { %v343_v9 = vpop.f32.mrf.mxu0  ;;  %v416_v10 = vpop.f32.mrf.mxu1 }
 0x103   :  { %2896 = vst [vmem:[#allocation14_spill] sm:$0xff] %v2447_v54  ;;  %2897 = vst [vmem:[#allocation15_spill] sm:$0xff] %v2450_v57  ;;  %v2452_v13 = vadd.f32 %v343_v9, %v90_v28  ;;  %v2455_v14 = vadd.f32 %v416_v10, %v2415_v25 }
 0x104   :  { %v345_v0 = vpop.f32.mrf.mxu0  ;;  %v418_v17 = vpop.f32.mrf.mxu1 }
 0x105   :  { %2898 = vst [vmem:[#allocation16_spill] sm:$0xff] %v2452_v13  ;;  %2899 = vst [vmem:[#allocation17_spill] sm:$0xff] %v2455_v14  ;;  %v2457_v16 = vadd.f32 %v345_v0, %v86_v24  ;;  %v2460_v21 = vadd.f32 %v418_v17, %v2409_v20 }
 0x106   :  { %v347_v27 = vpop.f32.mrf.mxu0  ;;  %v420_v31 = vpop.f32.mrf.mxu1 }
 0x107   :  { %2900 = vst [vmem:[#allocation18_spill] sm:$0xff] %v2457_v16  ;;  %2901 = vst [vmem:[#allocation19_spill] sm:$0xff] %v2460_v21  ;;  %v2462_v54 = vadd.f32 %v347_v27, %v90_v28  ;;  %v2465_v32 = vadd.f32 %v420_v31, %v2415_v25 }
 0x108   :  { %v351_v57 = vpop.f32.mrf.mxu0  ;;  %v424_v9 = vpop.f32.mrf.mxu1 }
 0x109   :  { %2902 = vst [vmem:[#allocation20_spill] sm:$0xff] %v2462_v54  ;;  %2903 = vst [vmem:[#allocation21_spill] sm:$0xff] %v2465_v32  ;;  %v2467_v13 = vadd.f32 %v351_v57, %v86_v24  ;;  %v2470_v10 = vadd.f32 %v424_v9, %v2409_v20 }
 0x10a   :  { %v353_v14 = vpop.f32.mrf.mxu0  ;;  %v426_v0 = vpop.f32.mrf.mxu1 }
 0x10b   :  { %2904 = vst [vmem:[#allocation22_spill] sm:$0xff] %v2467_v13  ;;  %2905 = vst [vmem:[#allocation23_spill] sm:$0xff] %v2470_v10  ;;  %v2472_v16 = vadd.f32 %v353_v14, %v90_v28  ;;  %v2475_v17 = vadd.f32 %v426_v0, %v2415_v25  ;;  %v322_v13 = vadd.f32 %v2405_v18, %v86_v24 }
 0x10c   :  { %v355_v21 = vpop.f32.mrf.mxu0  ;;  %v428_v27 = vpop.f32.mrf.mxu1  ;;  %v324_v0 = vadd.f32 %v2411_v22, %v90_v28 }
 0x10d   :  { %2906 = vst [vmem:[#allocation24_spill] sm:$0xff] %v2472_v16  ;;  %2907 = vst [vmem:[#allocation25_spill] sm:$0xff] %v2475_v17  ;;  %v2477_v54 = vadd.f32 %v355_v21, %v86_v24  ;;  %v2480_v31 = vadd.f32 %v428_v27, %v2409_v20  ;;  %v397_v24 = vadd.f32 %v2413_v23, %v2415_v25 }
 0x10e   :  { %v357_v32 = vpop.f32.mrf.mxu0  ;;  %v430_v57 = vpop.f32.mrf.mxu1 }
 0x10f   :  { %2908 = vst [vmem:[#allocation26_spill] sm:$0xff] %v2477_v54  ;;  %2909 = vst [vmem:[#allocation27_spill] sm:$0xff] %v2480_v31  ;;  %v2483_v9 = vadd.f32 %v357_v32, %v90_v28  ;;  %v2486_v10 = vadd.f32 %v430_v57, %v2415_v25  ;;  %v395_v57 = vadd.f32 %v2407_v19, %v2409_v20  ;;  %v2496_v19 = vpop.permute.xlu0 %780 }
 0x110   :  { %v700_v14 = vpop.f32.mrf.mxu0  ;;  %v741_v16 = vpop.f32.mrf.mxu1  ;;  %vm782_vm4 = vcmp.eq.s32.totalorder %v2496_v19, 1 }
 0x111   :  { %v748_v17 = vadd.f32 %v700_v14, %v322_v13  ;;  %v750_v13 = vadd.f32 %v741_v16, %v395_v57  ;;  %vm1804_vm5 = vmpackc.low %vm782_vm4, %vm782_vm4 }
 0x112   :  { %v702_v26 = vpop.f32.mrf.mxu0  ;;  %v743_v21 = vpop.f32.mrf.mxu1 }
 0x113   :  { %v1765_v54 = vmul.f32 -1.442695, %v748_v17  ;;  %v749_v15 = vadd.f32 %v702_v26, %v324_v0  ;;  %v751_v32 = vadd.f32 %v743_v21, %v397_v24  ;;  %v2910_v24 = vmov 0  }
 0x114   :  { %v704_v27 = vpop.f32.mrf.mxu0  ;;  %v745_v31 = vpop.f32.mrf.mxu1  ;;  %v1164_v57 = vsel %vm1782_vm7, 1, %v2910_v24 }
 0x115   :  { %1917 = vpow2.f32 %v1765_v54  ;;  %v1766_v2 = vmul.f32 -1.442695, %v749_v15  ;;  %v1767_v22 = vmul.f32 -1.442695, %v751_v32  ;;  %v1035_v32 = vsel %vm1777_vm6, 1, %v2910_v24 }
 0x116   :  { %v705_v12 = vpop.f32.mrf.mxu0  ;;  %v746_v18 = vpop.f32.mrf.mxu1  ;;  %1037 = vperm.xlu1 %1816, %v1035_v32  }
 0x117   :  { %1919 = vpow2.f32 %v1766_v2 }
 0x118   :  { %1921 = vpow2.f32 %v1767_v22  ;;  %v1422_v22 = vsel %vm1792_vm8, 1, %v2910_v24 }
 0x11a   :  { %1166 = vperm.xlu1 %1816, %v1164_v57  }
 0x11e   :  { %1424 = vperm.xlu1 %1816, %v1422_v22  }
 0x122   :  { %v1918_v28 = vpop.eup %1917 }
 0x123   :  { %v755_v14 = vadd.f32 1.0, %v1918_v28  ;;  %v1680_v28 = vsel %vm1802_vm9, 1, %v2910_v24 }
 0x124   :  { %v1920_v17 = vpop.eup %1919  ;;  %1682 = vperm.xlu1 %1816, %v1680_v28  }
 0x125   :  { %1923 = vrcp.f32 %v755_v14  ;;  %v761_v26 = vadd.f32 1.0, %v1920_v17  ;;  %v1922_v12 = vpop.eup %1921 }
 0x126   :  { %1925 = vtanh.f32 %v750_v13  ;;  %v768_v31 = vadd.f32 1.0, %v1922_v12 }
 0x127   :  { %1927 = vrcp.f32 %v761_v26 }
 0x128   :  { %1929 = vrcp.f32 %v768_v31 }
 0x132   :  { %v1924_v15 = vpop.eup %1923 }
 0x133   :  { %v1926_v2 = vpop.eup %1925 }
 0x134   :  { %v1928_v54 = vpop.eup %1927  ;;  %v772_v25 = vmul.f32 %v1926_v2, %v1924_v15 }
 0x135   :  { %v771_v23 = vmul.f32 0.0, %v1928_v54  ;;  %v1930_v20 = vpop.eup %1929 }
 0x137   :  { %v2493_v0 = vadd.f32 %v772_v25, %v771_v23 }
 0x139   :  { %1931 = vtanh.f32 %v2493_v0 }
 0x146   :  { %v1932_v16 = vpop.eup %1931 }
 0x147   :  { %v775_v21 = vmul.f32 %v1932_v16, %v1930_v20 }
 0x149   :  { %v2504_v27 = vsel %vm782_vm4, %v775_v21, 0.0  ;;  %v1805_v18 = vpack.c.bf16 %v775_v21, %v775_v21 }
 0x14a   :  { %786 = vst [vmem:[%s2887_s5] sm:$0xff] %v2504_v27 }
 0x14b   :  { %1806 = vmatmul.mubr.msk.bf16.vlgmr.msra.gmra.mxu0 %vm1804_vm5, %v1805_v18  ;;  %1809 = vmatmul.mubr.msk.bf16.vlgmr.msra.gmra.mxu1 %vm1804_vm5, %v1805_v18 }
 0x14c   :  { %923 = vmatpush1.bf16.msra.mxu0 %v2244_v36  ;;  %964 = vmatpush1.bf16.msra.mxu1 %v2246_v37 }
 0x14d   :  { %924 = vmatprep.subr.bf16.mxu0 %v2250_v38  ;;  %965 = vmatprep.subr.bf16.mxu1 %v2252_v39 }
 0x14e   :  { %954 = vmatprep.mubr.bf16.mxu0 %v2910_v24  ;;  %995 = vmatprep.mubr.bf16.mxu1 %v2910_v24 }
 0x150   :  { %925 = vmatpush1.bf16.msra.mxu0 %v2254_v40  ;;  %966 = vmatpush1.bf16.msra.mxu1 %v2258_v41 }
 0x151   :  { %926 = vmatprep.subr.bf16.mxu0 %v2262_v42  ;;  %967 = vmatprep.subr.bf16.mxu1 %v2264_v43 }
 0x154   :  { %927 = vmatpush1.bf16.msra.mxu0 %v2271_v45  ;;  %968 = vmatpush1.bf16.msra.mxu1 %v2273_v46 }
 0x155   :  { %928 = vmatprep.subr.bf16.mxu0 %v2277_v47  ;;  %969 = vmatprep.subr.bf16.mxu1 %v2281_v48 }
 0x158   :  { %929 = vmatpush1.bf16.msra.mxu0 %v2283_v49  ;;  %970 = vmatpush1.bf16.msra.mxu1 %v2285_v50 }
 0x159   :  { %930 = vmatprep.subr.bf16.mxu0 %v2289_v51  ;;  %971 = vmatprep.subr.bf16.mxu1 %v2293_v52 }
 0x15c   :  { %931 = vmatpush1.bf16.msra.mxu0 %v2308_v55  ;;  %972 = vmatpush1.bf16.msra.mxu1 %v2310_v56 }
 0x15d   :  { %932 = vmatprep.subr.bf16.mxu0 %v2315_v58  ;;  %973 = vmatprep.subr.bf16.mxu1 %v2317_v59 }
 0x160   :  { %933 = vmatpush1.bf16.msra.mxu0 %v2322_v60  ;;  %974 = vmatpush1.bf16.msra.mxu1 %v2324_v61 }
 0x161   :  { %934 = vmatprep.subr.bf16.mxu0 %v2329_v63  ;;  %975 = vmatprep.subr.bf16.mxu1 %v2331_v1 }
 0x164   :  { %935 = vmatpush1.bf16.msra.mxu0 %v2340_v3  ;;  %976 = vmatpush1.bf16.msra.mxu1 %v2342_v4 }
 0x165   :  { %936 = vmatprep.subr.bf16.mxu0 %v2346_v5  ;;  %977 = vmatprep.subr.bf16.mxu1 %v2348_v6 }
 0x168   :  { %937 = vmatpush1.bf16.msra.mxu0 %v2353_v7  ;;  %978 = vmatpush1.bf16.msra.mxu1 %v2355_v8 }
 0x169   :  { %1051 = vmatprep.subr.bf16.mxu0 %v2237_v33  ;;  %1092 = vmatprep.subr.bf16.mxu1 %v2239_v34 }
 0x20b   :  { %v827_v13 = vpop.f32.mrf.mxu0  ;;  %v868_v14 = vpop.f32.mrf.mxu1 }
 0x20c   :  { %v875_v17 = vadd.f32 %v827_v13, %v2417_v29  ;;  %v877_v16 = vadd.f32 %v868_v14, %v2420_v30  ;;  %v909_v14 = vpop.permute.xlu0 %908 }
 0x20d   :  { %v829_v26 = vpop.f32.mrf.mxu0  ;;  %v870_v12 = vpop.f32.mrf.mxu1  ;;  %vm910_vm10 = vcmp.eq.s32.totalorder %v909_v14, 1 }
 0x20e   :  { %v1769_v15 = vmul.f32 -1.442695, %v875_v17  ;;  %v876_v2 = vadd.f32 %v829_v26, %v2422_v35  ;;  %v878_v53 = vadd.f32 %v870_v12, %v2425_v44  ;;  %v784_v44 = vsel %vm782_vm4, %v2493_v0, 0.0 }
 0x20f   :  { %v831_v54 = vpop.f32.mrf.mxu0  ;;  %v872_v31 = vpop.f32.mrf.mxu1 }
 0x210   :  { %1933 = vpow2.f32 %v1769_v15  ;;  %v1770_v23 = vmul.f32 -1.442695, %v876_v2  ;;  %v1771_v21 = vmul.f32 -1.442695, %v878_v53 }
 0x211   :  { %v832_v25 = vpop.f32.mrf.mxu0  ;;  %v873_v20 = vpop.f32.mrf.mxu1 }
 0x212   :  { %1935 = vpow2.f32 %v1770_v23 }
 0x213   :  { %1937 = vtanh.f32 %v877_v16 }
 0x214   :  { %1939 = vpow2.f32 %v1771_v21 }
 0x21d   :  { %v1934_v18 = vpop.eup %1933 }
 0x21e   :  { %v882_v32 = vadd.f32 1.0, %v1934_v18 }
 0x21f   :  { %v1936_v29 = vpop.eup %1935 }
 0x220   :  { %1941 = vrcp.f32 %v882_v32  ;;  %v888_v57 = vadd.f32 1.0, %v1936_v29  ;;  %v1938_v35 = vpop.eup %1937 }
 0x221   :  { %v1940_v22 = vpop.eup %1939 }
 0x222   :  { %1943 = vrcp.f32 %v888_v57  ;;  %v895_v26 = vadd.f32 1.0, %v1940_v22 }
 0x224   :  { %1945 = vrcp.f32 %v895_v26 }
 0x22d   :  { %v1942_v28 = vpop.eup %1941 }
 0x22e   :  { %v899_v13 = vmul.f32 %v1942_v28, %v1938_v35  ;;  %v2911_v28 = vld [vmem:[#allocation9_spill] sm:$0xff] }
 0x22f   :  { %v1944_v17 = vpop.eup %1943 }
 0x230   :  { %v898_v30 = vmul.f32 %v1944_v17, %v784_v44  ;;  %v2912_v17 = vld [vmem:[#allocation8_spill] sm:$0xff] }
 0x231   :  { %v1946_v2 = vpop.eup %1945 }
 0x232   :  { %v900_v12 = vadd.f32 %v899_v13, %v898_v30 }
 0x234   :  { %1947 = vtanh.f32 %v900_v12  ;;  %v2559_v15 = vsel %vm910_vm10, %v900_v12, %v784_v44 }
 0x241   :  { %v1948_v54 = vpop.eup %1947 }
 0x242   :  { %v902_v31 = vmul.f32 %v1948_v54, %v1946_v2 }
 0x244   :  { %v2562_v23 = vsel %vm910_vm10, %v902_v31, %v2504_v27  ;;  %v913_v25 = vsel %vm910_vm10, %v902_v31, 0.0  ;;  %v1038_v31 = vpop.permute.xlu1 %1037 }
 0x245   :  { %1773 = vst [vmem:[%s2887_s5 + $0x8] sm:$0xff] %v913_v25  ;;  %v921_v0 = vpack.c.bf16 %v2562_v23, %v2562_v23  ;;  %vm1039_vm11 = vcmp.eq.s32.totalorder %v1038_v31, 1 }
 0x247   :  { %955 = vmatmul.mubr.bf16.vlgmr.msra.gmra.mxu0 %v921_v0  ;;  %996 = vmatmul.mubr.bf16.vlgmr.msra.gmra.mxu1 %v921_v0 }
 0x248   :  { %1052 = vmatpush1.bf16.msra.mxu0 %v2244_v36  ;;  %1093 = vmatpush1.bf16.msra.mxu1 %v2246_v37 }
 0x249   :  { %1053 = vmatprep.subr.bf16.mxu0 %v2250_v38  ;;  %1094 = vmatprep.subr.bf16.mxu1 %v2252_v39 }
 0x24a   :  { %1083 = vmatprep.mubr.bf16.mxu0 %v2910_v24  ;;  %1124 = vmatprep.mubr.bf16.mxu1 %v2910_v24 }
 0x24c   :  { %1054 = vmatpush1.bf16.msra.mxu0 %v2254_v40  ;;  %1095 = vmatpush1.bf16.msra.mxu1 %v2258_v41 }
 0x24d   :  { %1055 = vmatprep.subr.bf16.mxu0 %v2262_v42  ;;  %1096 = vmatprep.subr.bf16.mxu1 %v2264_v43 }
 0x250   :  { %1056 = vmatpush1.bf16.msra.mxu0 %v2271_v45  ;;  %1097 = vmatpush1.bf16.msra.mxu1 %v2273_v46 }
 0x251   :  { %1057 = vmatprep.subr.bf16.mxu0 %v2277_v47  ;;  %1098 = vmatprep.subr.bf16.mxu1 %v2281_v48 }
 0x254   :  { %1058 = vmatpush1.bf16.msra.mxu0 %v2283_v49  ;;  %1099 = vmatpush1.bf16.msra.mxu1 %v2285_v50 }
 0x255   :  { %1059 = vmatprep.subr.bf16.mxu0 %v2289_v51  ;;  %1100 = vmatprep.subr.bf16.mxu1 %v2293_v52 }
 0x258   :  { %1060 = vmatpush1.bf16.msra.mxu0 %v2308_v55  ;;  %1101 = vmatpush1.bf16.msra.mxu1 %v2310_v56 }
 0x259   :  { %1061 = vmatprep.subr.bf16.mxu0 %v2315_v58  ;;  %1102 = vmatprep.subr.bf16.mxu1 %v2317_v59 }
 0x25c   :  { %1062 = vmatpush1.bf16.msra.mxu0 %v2322_v60  ;;  %1103 = vmatpush1.bf16.msra.mxu1 %v2324_v61 }
 0x25d   :  { %1063 = vmatprep.subr.bf16.mxu0 %v2329_v63  ;;  %1104 = vmatprep.subr.bf16.mxu1 %v2331_v1 }
 0x260   :  { %1064 = vmatpush1.bf16.msra.mxu0 %v2340_v3  ;;  %1105 = vmatpush1.bf16.msra.mxu1 %v2342_v4 }
 0x261   :  { %1065 = vmatprep.subr.bf16.mxu0 %v2346_v5  ;;  %1106 = vmatprep.subr.bf16.mxu1 %v2348_v6 }
 0x264   :  { %1066 = vmatpush1.bf16.msra.mxu0 %v2353_v7  ;;  %1107 = vmatpush1.bf16.msra.mxu1 %v2355_v8 }
 0x265   :  { %1180 = vmatprep.subr.bf16.mxu0 %v2237_v33  ;;  %1221 = vmatprep.subr.bf16.mxu1 %v2239_v34 }
 0x307   :  { %v956_v19 = vpop.f32.mrf.mxu0  ;;  %v997_v27 = vpop.f32.mrf.mxu1 }
 0x308   :  { %v1004_v20 = vadd.f32 %v956_v19, %v2427_v62  ;;  %v1006_v44 = vadd.f32 %v997_v27, %v2912_v17 }
 0x309   :  { %v958_v53 = vpop.f32.mrf.mxu0  ;;  %v999_v16 = vpop.f32.mrf.mxu1 }
 0x30a   :  { %v1774_v21 = vmul.f32 -1.442695, %v1004_v20  ;;  %v1005_v18 = vadd.f32 %v958_v53, %v2432_v11  ;;  %v1007_v13 = vadd.f32 %v999_v16, %v2911_v28  ;;  %v2915_v28 = vld [vmem:[#allocation13_spill] sm:$0xff] }
 0x30b   :  { %v960_v32 = vpop.f32.mrf.mxu0  ;;  %v1001_v29 = vpop.f32.mrf.mxu1 }
 0x30c   :  { %1949 = vpow2.f32 %v1774_v21  ;;  %v1775_v57 = vmul.f32 -1.442695, %v1005_v18  ;;  %v1776_v26 = vmul.f32 -1.442695, %v1007_v13  ;;  %v2916_v13 = vld [vmem:[#allocation11_spill] sm:$0xff] }
 0x30d   :  { %v961_v35 = vpop.f32.mrf.mxu0  ;;  %v1002_v22 = vpop.f32.mrf.mxu1 }
 0x30e   :  { %1951 = vpow2.f32 %v1775_v57 }
 0x30f   :  { %1953 = vtanh.f32 %v1006_v44 }
 0x310   :  { %1955 = vpow2.f32 %v1776_v26 }
 0x319   :  { %v1950_v30 = vpop.eup %1949 }
 0x31a   :  { %v1011_v14 = vadd.f32 1.0, %v1950_v30 }
 0x31b   :  { %v1952_v62 = vpop.eup %1951 }
 0x31c   :  { %1957 = vrcp.f32 %v1011_v14  ;;  %v1017_v12 = vadd.f32 1.0, %v1952_v62  ;;  %v1954_v11 = vpop.eup %1953 }
 0x31d   :  { %v1956_v2 = vpop.eup %1955 }
 0x31e   :  { %1959 = vrcp.f32 %v1017_v12  ;;  %v1024_v19 = vadd.f32 1.0, %v1956_v2 }
 0x320   :  { %1961 = vrcp.f32 %v1024_v19 }
 0x329   :  { %v1958_v54 = vpop.eup %1957 }
 0x32a   :  { %v1028_v25 = vmul.f32 %v1958_v54, %v1954_v11 }
 0x32b   :  { %v1960_v0 = vpop.eup %1959 }
 0x32c   :  { %v1027_v20 = vmul.f32 %v1960_v0, %v2559_v15  ;;  %v1167_v0 = vpop.permute.xlu1 %1166 }
 0x32d   :  { %v1962_v16 = vpop.eup %1961  ;;  %vm1168_vm12 = vcmp.eq.s32.totalorder %v1167_v0, 1  ;;  %v2758_v0 = vld [vmem:[#allocation5 + $0x8c] ss:$16 sps:$4 sm:$0xff]  }
 0x32e   :  { %v1029_v27 = vadd.f32 %v1028_v25, %v1027_v20 }
 0x330   :  { %1963 = vtanh.f32 %v1029_v27  ;;  %v2609_v53 = vsel %vm1039_vm11, %v1029_v27, %v2559_v15 }
 0x33d   :  { %v1964_v21 = vpop.eup %1963 }
 0x33e   :  { %v1031_v18 = vmul.f32 %v1964_v21, %v1962_v16 }
 0x340   :  { %v2612_v32 = vsel %vm1039_vm11, %v1031_v18, %v2562_v23  ;;  %v1042_v29 = vsel %vm1039_vm11, %v1031_v18, 0.0 }
 0x341   :  { %1778 = vst [vmem:[%s2887_s5 + $0x10] sm:$0xff] %v1042_v29  ;;  %v1050_v57 = vpack.c.bf16 %v2612_v32, %v2612_v32 }
 0x343   :  { %1084 = vmatmul.mubr.bf16.vlgmr.msra.gmra.mxu0 %v1050_v57  ;;  %1125 = vmatmul.mubr.bf16.vlgmr.msra.gmra.mxu1 %v1050_v57 }
 0x344   :  { %1181 = vmatpush1.bf16.msra.mxu0 %v2244_v36  ;;  %1222 = vmatpush1.bf16.msra.mxu1 %v2246_v37 }
 0x345   :  { %1182 = vmatprep.subr.bf16.mxu0 %v2250_v38  ;;  %1223 = vmatprep.subr.bf16.mxu1 %v2252_v39  ;;  %v2913_v38 = vld [vmem:[#allocation10_spill] sm:$0xff] }
 0x346   :  { %1212 = vmatprep.mubr.bf16.mxu0 %v2910_v24  ;;  %1253 = vmatprep.mubr.bf16.mxu1 %v2910_v24 }
 0x348   :  { %1183 = vmatpush1.bf16.msra.mxu0 %v2254_v40  ;;  %1224 = vmatpush1.bf16.msra.mxu1 %v2258_v41 }
 0x349   :  { %1184 = vmatprep.subr.bf16.mxu0 %v2262_v42  ;;  %1225 = vmatprep.subr.bf16.mxu1 %v2264_v43  ;;  %v2914_v43 = vld [vmem:[#allocation12_spill] sm:$0xff] }
 0x34c   :  { %1185 = vmatpush1.bf16.msra.mxu0 %v2271_v45  ;;  %1226 = vmatpush1.bf16.msra.mxu1 %v2273_v46 }
 0x34d   :  { %1186 = vmatprep.subr.bf16.mxu0 %v2277_v47  ;;  %1227 = vmatprep.subr.bf16.mxu1 %v2281_v48 }
 0x350   :  { %1187 = vmatpush1.bf16.msra.mxu0 %v2283_v49  ;;  %1228 = vmatpush1.bf16.msra.mxu1 %v2285_v50 }
 0x351   :  { %1188 = vmatprep.subr.bf16.mxu0 %v2289_v51  ;;  %1229 = vmatprep.subr.bf16.mxu1 %v2293_v52 }
 0x354   :  { %1189 = vmatpush1.bf16.msra.mxu0 %v2308_v55  ;;  %1230 = vmatpush1.bf16.msra.mxu1 %v2310_v56 }
 0x355   :  { %1190 = vmatprep.subr.bf16.mxu0 %v2315_v58  ;;  %1231 = vmatprep.subr.bf16.mxu1 %v2317_v59 }
 0x358   :  { %1191 = vmatpush1.bf16.msra.mxu0 %v2322_v60  ;;  %1232 = vmatpush1.bf16.msra.mxu1 %v2324_v61 }
 0x359   :  { %1192 = vmatprep.subr.bf16.mxu0 %v2329_v63  ;;  %1233 = vmatprep.subr.bf16.mxu1 %v2331_v1 }
 0x35c   :  { %1193 = vmatpush1.bf16.msra.mxu0 %v2340_v3  ;;  %1234 = vmatpush1.bf16.msra.mxu1 %v2342_v4 }
 0x35d   :  { %1194 = vmatprep.subr.bf16.mxu0 %v2346_v5  ;;  %1235 = vmatprep.subr.bf16.mxu1 %v2348_v6 }
 0x360   :  { %1195 = vmatpush1.bf16.msra.mxu0 %v2353_v7  ;;  %1236 = vmatpush1.bf16.msra.mxu1 %v2355_v8 }
 0x361   :  { %1309 = vmatprep.subr.bf16.mxu0 %v2237_v33  ;;  %1350 = vmatprep.subr.bf16.mxu1 %v2239_v34 }
 0x403   :  { %v1085_v36 = vpop.f32.mrf.mxu0  ;;  %v1126_v37 = vpop.f32.mrf.mxu1 }
 0x404   :  { %v1133_v39 = vadd.f32 %v1085_v36, %v2913_v38  ;;  %v1135_v34 = vadd.f32 %v1126_v37, %v2916_v13  ;;  %v2669_v36 = vld [vmem:[#allocation5 + $0xe0] ss:$16 sps:$4 sm:$0xff]   ;;  %v2678_v37 = vld [vmem:[#allocation5 + $0xcc] ss:$16 sps:$4 sm:$0xff]  }
 0x405   :  { %v1087_v40 = vpop.f32.mrf.mxu0  ;;  %v1128_v41 = vpop.f32.mrf.mxu1  ;;  %v2683_v38 = vld [vmem:[#allocation5 + $0xc0] ss:$16 sps:$4 sm:$0xff]  }
 0x406   :  { %v1779_v42 = vmul.f32 -1.442695, %v1133_v39  ;;  %v1134_v45 = vadd.f32 %v1087_v40, %v2914_v43  ;;  %v1136_v33 = vadd.f32 %v1128_v41, %v2915_v28  ;;  %v2686_v39 = vld [vmem:[#allocation5 + $0xc8] ss:$16 sps:$4 sm:$0xff]   ;;  %v2689_v40 = vld [vmem:[#allocation5 + $0xa4] ss:$16 sps:$4 sm:$0xff]  }
 0x407   :  { %v1089_v46 = vpop.f32.mrf.mxu0  ;;  %v1130_v15 = vpop.f32.mrf.mxu1  ;;  %v2692_v41 = vld [vmem:[#allocation5 + $0xac] ss:$16 sps:$4 sm:$0xff]   ;;  %v2698_v43 = vld [vmem:[#allocation5 + $0xa8] ss:$16 sps:$4 sm:$0xff]  }
 0x408   :  { %1965 = vpow2.f32 %v1779_v42  ;;  %v1780_v23 = vmul.f32 -1.442695, %v1134_v45  ;;  %v1781_v17 = vmul.f32 -1.442695, %v1136_v33  ;;  %v2695_v42 = vld [vmem:[#allocation5 + $0xa0] ss:$16 sps:$4 sm:$0xff]  }
 0x409   :  { %v1090_v35 = vpop.f32.mrf.mxu0  ;;  %v1131_v22 = vpop.f32.mrf.mxu1 }
 0x40a   :  { %1967 = vpow2.f32 %v1780_v23 }
 0x40b   :  { %1969 = vtanh.f32 %v1135_v34 }
 0x40c   :  { %1971 = vpow2.f32 %v1781_v17 }
 0x415   :  { %v1966_v44 = vpop.eup %1965 }
 0x416   :  { %v1140_v26 = vadd.f32 1.0, %v1966_v44 }
 0x417   :  { %v1968_v30 = vpop.eup %1967 }
 0x418   :  { %1973 = vrcp.f32 %v1140_v26  ;;  %v1146_v14 = vadd.f32 1.0, %v1968_v30  ;;  %v1970_v62 = vpop.eup %1969  ;;  %v1296_v26 = vpop.permute.xlu0 %1295 }
 0x419   :  { %v1972_v12 = vpop.eup %1971  ;;  %vm1297_vm13 = vcmp.eq.s32.totalorder %v1296_v26, 1 }
 0x41a   :  { %1975 = vrcp.f32 %v1146_v14  ;;  %v1153_v31 = vadd.f32 1.0, %v1972_v12 }
 0x41c   :  { %1977 = vrcp.f32 %v1153_v31 }
 0x425   :  { %v1974_v11 = vpop.eup %1973 }
 0x426   :  { %v1157_v2 = vmul.f32 %v1974_v11, %v1970_v62 }
 0x427   :  { %v1976_v54 = vpop.eup %1975 }
 0x428   :  { %v1156_v25 = vmul.f32 %v1976_v54, %v2609_v53 }
 0x429   :  { %v1978_v27 = vpop.eup %1977 }
 0x42a   :  { %v1158_v19 = vadd.f32 %v1157_v2, %v1156_v25  ;;  %v2755_v25 = vld [vmem:[#allocation5 + $0x84] ss:$16 sps:$4 sm:$0xff]  }
 0x42c   :  { %1979 = vtanh.f32 %v1158_v19  ;;  %v2659_v20 = vsel %vm1168_vm12, %v1158_v19, %v2609_v53  ;;  %v2672_v53 = vld [vmem:[#allocation5 + $0xe8] ss:$16 sps:$4 sm:$0xff]   ;;  %v2761_v19 = vld [vmem:[#allocation5 + $0x80] ss:$16 sps:$4 sm:$0xff]  }
 0x439   :  { %v1980_v16 = vpop.eup %1979 }
 0x43a   :  { %v1160_v21 = vmul.f32 %v1980_v16, %v1978_v27  ;;  %v2767_v27 = vld [vmem:[#allocation5 + $0x64] ss:$16 sps:$4 sm:$0xff]   ;;  %v2770_v16 = vld [vmem:[#allocation5 + $0x6c] ss:$16 sps:$4 sm:$0xff]  }
 0x43c   :  { %v2662_v18 = vsel %vm1168_vm12, %v1160_v21, %v2612_v32  ;;  %v1171_v29 = vsel %vm1168_vm12, %v1160_v21, 0.0  ;;  %v2675_v32 = vld [vmem:[#allocation5 + $0xc4] ss:$16 sps:$4 sm:$0xff]   ;;  %v2773_v21 = vld [vmem:[#allocation5 + $0x60] ss:$16 sps:$4 sm:$0xff]  }
 0x43d   :  { %1783 = vst [vmem:[%s2887_s5 + $0x18] sm:$0xff] %v1171_v29  ;;  %v1179_v57 = vpack.c.bf16 %v2662_v18, %v2662_v18  ;;  %v2779_v29 = vld [vmem:[#allocation5 + $0x44] ss:$16 sps:$4 sm:$0xff]  }
 0x43f   :  { %1213 = vmatmul.mubr.bf16.vlgmr.msra.gmra.mxu0 %v1179_v57  ;;  %1254 = vmatmul.mubr.bf16.vlgmr.msra.gmra.mxu1 %v1179_v57  ;;  %v2782_v57 = vld [vmem:[#allocation5 + $0x4c] ss:$16 sps:$4 sm:$0xff]  }
 0x440   :  { %1310 = vmatpush1.bf16.msra.mxu0 %v2669_v36  ;;  %1351 = vmatpush1.bf16.msra.mxu1 %v2672_v53 }
 0x441   :  { %1311 = vmatprep.subr.bf16.mxu0 %v2675_v32  ;;  %1352 = vmatprep.subr.bf16.mxu1 %v2678_v37 }
 0x442   :  { %1341 = vmatprep.mubr.bf16.mxu0 %v2910_v24  ;;  %1382 = vmatprep.mubr.bf16.mxu1 %v2910_v24 }
 0x444   :  { %1312 = vmatpush1.bf16.msra.mxu0 %v2683_v38  ;;  %1353 = vmatpush1.bf16.msra.mxu1 %v2686_v39 }
 0x445   :  { %1313 = vmatprep.subr.bf16.mxu0 %v2689_v40  ;;  %1354 = vmatprep.subr.bf16.mxu1 %v2692_v41 }
 0x448   :  { %1314 = vmatpush1.bf16.msra.mxu0 %v2695_v42  ;;  %1355 = vmatpush1.bf16.msra.mxu1 %v2698_v43 }
 0x449   :  { %1315 = vmatprep.subr.bf16.mxu0 %v2277_v47  ;;  %1356 = vmatprep.subr.bf16.mxu1 %v2281_v48  ;;  %v2721_v47 = vld [vmem:[#allocation5 + $0xe4] ss:$16 sps:$4 sm:$0xff]   ;;  %v2724_v48 = vld [vmem:[#allocation5 + $0xec] ss:$16 sps:$4 sm:$0xff]  }
 0x44c   :  { %1316 = vmatpush1.bf16.msra.mxu0 %v2283_v49  ;;  %1357 = vmatpush1.bf16.msra.mxu1 %v2285_v50 }
 0x44d   :  { %1317 = vmatprep.subr.bf16.mxu0 %v2289_v51  ;;  %1358 = vmatprep.subr.bf16.mxu1 %v2293_v52  ;;  %v2917_v51 = vld [vmem:[#allocation14_spill] sm:$0xff] }
 0x450   :  { %1318 = vmatpush1.bf16.msra.mxu0 %v2308_v55  ;;  %1359 = vmatpush1.bf16.msra.mxu1 %v2310_v56 }
 0x451   :  { %1319 = vmatprep.subr.bf16.mxu0 %v2315_v58  ;;  %1360 = vmatprep.subr.bf16.mxu1 %v2317_v59  ;;  %v2918_v59 = vld [vmem:[#allocation16_spill] sm:$0xff] }
 0x454   :  { %1320 = vmatpush1.bf16.msra.mxu0 %v2322_v60  ;;  %1361 = vmatpush1.bf16.msra.mxu1 %v2324_v61 }
 0x455   :  { %1321 = vmatprep.subr.bf16.mxu0 %v2329_v63  ;;  %1362 = vmatprep.subr.bf16.mxu1 %v2331_v1 }
 0x458   :  { %1322 = vmatpush1.bf16.msra.mxu0 %v2340_v3  ;;  %1363 = vmatpush1.bf16.msra.mxu1 %v2342_v4 }
 0x459   :  { %1323 = vmatprep.subr.bf16.mxu0 %v2346_v5  ;;  %1364 = vmatprep.subr.bf16.mxu1 %v2348_v6  ;;  %v2919_v5 = vld [vmem:[#allocation17_spill] sm:$0xff] }
 0x45c   :  { %1324 = vmatpush1.bf16.msra.mxu0 %v2353_v7  ;;  %1365 = vmatpush1.bf16.msra.mxu1 %v2355_v8  ;;  %v2920_v7 = vld [vmem:[#allocation15_spill] sm:$0xff] }
 0x45d   :  { %1438 = vmatprep.subr.bf16.mxu0 %v2721_v47  ;;  %1479 = vmatprep.subr.bf16.mxu1 %v2724_v48 }
 0x4ff   :  { %v1214_v49 = vpop.f32.mrf.mxu0  ;;  %v1255_v50 = vpop.f32.mrf.mxu1 }
 0x500   :  { %v1262_v52 = vadd.f32 %v1214_v49, %v2917_v51  ;;  %v1264_v8 = vadd.f32 %v1255_v50, %v2920_v7  ;;  %v2785_v49 = vld [vmem:[#allocation5 + $0x40] ss:$16 sps:$4 sm:$0xff]   ;;  %v2788_v50 = vld [vmem:[#allocation5 + $0x48] ss:$16 sps:$4 sm:$0xff]   ;;  %v2791_v51 = vld [vmem:[#allocation5 + $0x24] ss:$16 sps:$4 sm:$0xff]  }
 0x501   :  { %v1216_v55 = vpop.f32.mrf.mxu0  ;;  %v1257_v56 = vpop.f32.mrf.mxu1 }
 0x502   :  { %v1784_v58 = vmul.f32 -1.442695, %v1262_v52  ;;  %v1263_v60 = vadd.f32 %v1216_v55, %v2918_v59  ;;  %v1265_v6 = vadd.f32 %v1257_v56, %v2919_v5  ;;  %v2794_v52 = vld [vmem:[#allocation5 + $0x2c] ss:$16 sps:$4 sm:$0xff]   ;;  %v2797_v55 = vld [vmem:[#allocation5 + $0x20] ss:$16 sps:$4 sm:$0xff]  }
 0x503   :  { %v1218_v61 = vpop.f32.mrf.mxu0  ;;  %v1259_v63 = vpop.f32.mrf.mxu1  ;;  %v2800_v56 = vld [vmem:[#allocation5 + $0x28] ss:$16 sps:$4 sm:$0xff]   ;;  %v2806_v59 = vld [vmem:[#allocation5 + $0xc] ss:$16 sps:$4 sm:$0xff]  }
 0x504   :  { %1981 = vpow2.f32 %v1784_v58  ;;  %v1785_v1 = vmul.f32 -1.442695, %v1263_v60  ;;  %v1786_v45 = vmul.f32 -1.442695, %v1265_v6  ;;  %v2803_v58 = vld [vmem:[#allocation5 + $0x4] ss:$16 sps:$4 sm:$0xff]  }
 0x505   :  { %v1219_v3 = vpop.f32.mrf.mxu0  ;;  %v1260_v4 = vpop.f32.mrf.mxu1  ;;  %v2809_v60 = vld [vmem:[#allocation5] ss:$16 sps:$4 sm:$0xff]   ;;  %v2812_v61 = vld [vmem:[#allocation5 + $0x8] ss:$16 sps:$4 sm:$0xff]  }
 0x506   :  { %1983 = vpow2.f32 %v1785_v1  ;;  %v2921_v3 = vld [vmem:[#allocation18_spill] sm:$0xff] }
 0x507   :  { %1985 = vtanh.f32 %v1264_v8  ;;  %v2922_v8 = vld [vmem:[#allocation20_spill] sm:$0xff] }
 0x508   :  { %1987 = vpow2.f32 %v1786_v45 }
 0x511   :  { %v1982_v46 = vpop.eup %1981 }
 0x512   :  { %v1269_v15 = vadd.f32 1.0, %v1982_v46 }
 0x513   :  { %v1984_v23 = vpop.eup %1983 }
 0x514   :  { %1989 = vrcp.f32 %v1269_v15  ;;  %v1275_v35 = vadd.f32 1.0, %v1984_v23  ;;  %v1986_v22 = vpop.eup %1985 }
 0x515   :  { %v1988_v28 = vpop.eup %1987 }
 0x516   :  { %1991 = vrcp.f32 %v1275_v35  ;;  %v1282_v17 = vadd.f32 1.0, %v1988_v28  ;;  %v2923_v28 = vld [vmem:[#allocation21_spill] sm:$0xff] }
 0x518   :  { %1993 = vrcp.f32 %v1282_v17 }
 0x521   :  { %v1990_v33 = vpop.eup %1989 }
 0x522   :  { %v1286_v13 = vmul.f32 %v1990_v33, %v1986_v22  ;;  %v2924_v33 = vld [vmem:[#allocation19_spill] sm:$0xff] }
 0x523   :  { %v1992_v34 = vpop.eup %1991 }
 0x524   :  { %v1285_v44 = vmul.f32 %v1992_v34, %v2659_v20 }
 0x525   :  { %v1994_v62 = vpop.eup %1993 }
 0x526   :  { %v1287_v30 = vadd.f32 %v1286_v13, %v1285_v44 }
 0x528   :  { %1995 = vtanh.f32 %v1287_v30  ;;  %v2733_v14 = vsel %vm1297_vm13, %v1287_v30, %v2659_v20  ;;  %v2764_v20 = vld [vmem:[#allocation5 + $0x88] ss:$16 sps:$4 sm:$0xff]  }
 0x535   :  { %v1996_v12 = vpop.eup %1995 }
 0x536   :  { %v1289_v11 = vmul.f32 %v1996_v12, %v1994_v62 }
 0x538   :  { %v2736_v2 = vsel %vm1297_vm13, %v1289_v11, %v2662_v18  ;;  %v1300_v54 = vsel %vm1297_vm13, %v1289_v11, 0.0  ;;  %v2776_v18 = vld [vmem:[#allocation5 + $0x68] ss:$16 sps:$4 sm:$0xff]  }
 0x539   :  { %1788 = vst [vmem:[%s2887_s5 + $0x20] sm:$0xff] %v1300_v54  ;;  %v1308_v31 = vpack.c.bf16 %v2736_v2, %v2736_v2 }
 0x53b   :  { %1342 = vmatmul.mubr.bf16.vlgmr.msra.gmra.mxu0 %v1308_v31  ;;  %1383 = vmatmul.mubr.bf16.vlgmr.msra.gmra.mxu1 %v1308_v31 }
 0x53c   :  { %1439 = vmatpush1.bf16.msra.mxu0 %v2669_v36  ;;  %1480 = vmatpush1.bf16.msra.mxu1 %v2672_v53 }
 0x53d   :  { %1440 = vmatprep.subr.bf16.mxu0 %v2675_v32  ;;  %1481 = vmatprep.subr.bf16.mxu1 %v2678_v37 }
 0x53e   :  { %1470 = vmatprep.mubr.bf16.mxu0 %v2910_v24  ;;  %1511 = vmatprep.mubr.bf16.mxu1 %v2910_v24 }
 0x540   :  { %1441 = vmatpush1.bf16.msra.mxu0 %v2683_v38  ;;  %1482 = vmatpush1.bf16.msra.mxu1 %v2686_v39 }
 0x541   :  { %1442 = vmatprep.subr.bf16.mxu0 %v2689_v40  ;;  %1483 = vmatprep.subr.bf16.mxu1 %v2692_v41 }
 0x544   :  { %1443 = vmatpush1.bf16.msra.mxu0 %v2695_v42  ;;  %1484 = vmatpush1.bf16.msra.mxu1 %v2698_v43 }
 0x545   :  { %1444 = vmatprep.subr.bf16.mxu0 %v2755_v25  ;;  %1485 = vmatprep.subr.bf16.mxu1 %v2758_v0 }
 0x548   :  { %1445 = vmatpush1.bf16.msra.mxu0 %v2761_v19  ;;  %1486 = vmatpush1.bf16.msra.mxu1 %v2764_v20 }
 0x549   :  { %1446 = vmatprep.subr.bf16.mxu0 %v2767_v27  ;;  %1487 = vmatprep.subr.bf16.mxu1 %v2770_v16 }
 0x54c   :  { %1447 = vmatpush1.bf16.msra.mxu0 %v2773_v21  ;;  %1488 = vmatpush1.bf16.msra.mxu1 %v2776_v18 }
 0x54d   :  { %1448 = vmatprep.subr.bf16.mxu0 %v2779_v29  ;;  %1489 = vmatprep.subr.bf16.mxu1 %v2782_v57 }
 0x550   :  { %1449 = vmatpush1.bf16.msra.mxu0 %v2785_v49  ;;  %1490 = vmatpush1.bf16.msra.mxu1 %v2788_v50 }
 0x551   :  { %1450 = vmatprep.subr.bf16.mxu0 %v2791_v51  ;;  %1491 = vmatprep.subr.bf16.mxu1 %v2794_v52 }
 0x554   :  { %1451 = vmatpush1.bf16.msra.mxu0 %v2797_v55  ;;  %1492 = vmatpush1.bf16.msra.mxu1 %v2800_v56 }
 0x555   :  { %1452 = vmatprep.subr.bf16.mxu0 %v2803_v58  ;;  %1493 = vmatprep.subr.bf16.mxu1 %v2806_v59 }
 0x558   :  { %1453 = vmatpush1.bf16.msra.mxu0 %v2809_v60  ;;  %1494 = vmatpush1.bf16.msra.mxu1 %v2812_v61 }
 0x559   :  { %1567 = vmatprep.subr.bf16.mxu0 %v2721_v47  ;;  %1608 = vmatprep.subr.bf16.mxu1 %v2724_v48 }
 0x5fb   :  { %v1343_v63 = vpop.f32.mrf.mxu0  ;;  %v1384_v1 = vpop.f32.mrf.mxu1 }
 0x5fc   :  { %v1391_v4 = vadd.f32 %v1343_v63, %v2921_v3  ;;  %v1393_v48 = vadd.f32 %v1384_v1, %v2924_v33  ;;  %v1425_v3 = vpop.permute.xlu1 %1424 }
 0x5fd   :  { %v1345_v5 = vpop.f32.mrf.mxu0  ;;  %v1386_v6 = vpop.f32.mrf.mxu1  ;;  %vm1426_vm14 = vcmp.eq.s32.totalorder %v1425_v3, 1  ;;  %v2930_v3 = vld [vmem:[#allocation27_spill] sm:$0xff] }
 0x5fe   :  { %v1789_v7 = vmul.f32 -1.442695, %v1391_v4  ;;  %v1392_v45 = vadd.f32 %v1345_v5, %v2922_v8  ;;  %v1394_v47 = vadd.f32 %v1386_v6, %v2923_v28 }
 0x5ff   :  { %v1347_v46 = vpop.f32.mrf.mxu0  ;;  %v1388_v15 = vpop.f32.mrf.mxu1 }
 0x600   :  { %1997 = vpow2.f32 %v1789_v7  ;;  %v1790_v23 = vmul.f32 -1.442695, %v1392_v45  ;;  %v1791_v13 = vmul.f32 -1.442695, %v1394_v47 }
 0x601   :  { %v1348_v35 = vpop.f32.mrf.mxu0  ;;  %v1389_v22 = vpop.f32.mrf.mxu1 }
 0x602   :  { %1999 = vpow2.f32 %v1790_v23 }
 0x603   :  { %2001 = vtanh.f32 %v1393_v48 }
 0x604   :  { %2003 = vpow2.f32 %v1791_v13  ;;  %v2929_v13 = vld [vmem:[#allocation26_spill] sm:$0xff] }
 0x60d   :  { %v1998_v34 = vpop.eup %1997 }
 0x60e   :  { %v1398_v17 = vadd.f32 1.0, %v1998_v34 }
 0x60f   :  { %v2000_v44 = vpop.eup %1999 }
 0x610   :  { %2005 = vrcp.f32 %v1398_v17  ;;  %v1404_v26 = vadd.f32 1.0, %v2000_v44  ;;  %v2002_v30 = vpop.eup %2001 }
 0x611   :  { %v2004_v62 = vpop.eup %2003 }
 0x612   :  { %2007 = vrcp.f32 %v1404_v26  ;;  %v1411_v31 = vadd.f32 1.0, %v2004_v62 }
 0x614   :  { %2009 = vrcp.f32 %v1411_v31 }
 0x61d   :  { %v2006_v12 = vpop.eup %2005 }
 0x61e   :  { %v1415_v11 = vmul.f32 %v2006_v12, %v2002_v30 }
 0x61f   :  { %v2008_v54 = vpop.eup %2007 }
 0x620   :  { %v1414_v63 = vmul.f32 %v2008_v54, %v2733_v14 }
 0x621   :  { %v2010_v5 = vpop.eup %2009 }
 0x622   :  { %v1416_v4 = vadd.f32 %v1415_v11, %v1414_v63 }
 0x624   :  { %2011 = vtanh.f32 %v1416_v4  ;;  %v2823_v1 = vsel %vm1426_vm14, %v1416_v4, %v2733_v14 }
 0x631   :  { %v2012_v6 = vpop.eup %2011 }
 0x632   :  { %v1418_v7 = vmul.f32 %v2012_v6, %v2010_v5 }
 0x634   :  { %v2826_v8 = vsel %vm1426_vm14, %v1418_v7, %v2736_v2  ;;  %v1429_v45 = vsel %vm1426_vm14, %v1418_v7, 0.0 }
 0x635   :  { %1793 = vst [vmem:[%s2887_s5 + $0x28] sm:$0xff] %v1429_v45  ;;  %v1437_v46 = vpack.c.bf16 %v2826_v8, %v2826_v8 }
 0x637   :  { %1471 = vmatmul.mubr.bf16.vlgmr.msra.gmra.mxu0 %v1437_v46  ;;  %1512 = vmatmul.mubr.bf16.vlgmr.msra.gmra.mxu1 %v1437_v46 }
 0x638   :  { %1568 = vmatpush1.bf16.msra.mxu0 %v2669_v36  ;;  %1609 = vmatpush1.bf16.msra.mxu1 %v2672_v53  ;;  %v2925_v53 = vld [vmem:[#allocation22_spill] sm:$0xff] }
 0x639   :  { %1569 = vmatprep.subr.bf16.mxu0 %v2675_v32  ;;  %1610 = vmatprep.subr.bf16.mxu1 %v2678_v37 }
 0x63a   :  { %1599 = vmatprep.mubr.bf16.mxu0 %v2910_v24  ;;  %1640 = vmatprep.mubr.bf16.mxu1 %v2910_v24 }
 0x63c   :  { %1570 = vmatpush1.bf16.msra.mxu0 %v2683_v38  ;;  %1611 = vmatpush1.bf16.msra.mxu1 %v2686_v39 }
 0x63d   :  { %1571 = vmatprep.subr.bf16.mxu0 %v2689_v40  ;;  %1612 = vmatprep.subr.bf16.mxu1 %v2692_v41  ;;  %v2926_v40 = vld [vmem:[#allocation24_spill] sm:$0xff] }
 0x640   :  { %1572 = vmatpush1.bf16.msra.mxu0 %v2695_v42  ;;  %1613 = vmatpush1.bf16.msra.mxu1 %v2698_v43 }
 0x641   :  { %1573 = vmatprep.subr.bf16.mxu0 %v2755_v25  ;;  %1614 = vmatprep.subr.bf16.mxu1 %v2758_v0  ;;  %v2927_v0 = vld [vmem:[#allocation25_spill] sm:$0xff] }
 0x644   :  { %1574 = vmatpush1.bf16.msra.mxu0 %v2761_v19  ;;  %1615 = vmatpush1.bf16.msra.mxu1 %v2764_v20  ;;  %v2928_v20 = vld [vmem:[#allocation23_spill] sm:$0xff] }
 0x645   :  { %1575 = vmatprep.subr.bf16.mxu0 %v2767_v27  ;;  %1616 = vmatprep.subr.bf16.mxu1 %v2770_v16 }
 0x648   :  { %1576 = vmatpush1.bf16.msra.mxu0 %v2773_v21  ;;  %1617 = vmatpush1.bf16.msra.mxu1 %v2776_v18 }
 0x649   :  { %1577 = vmatprep.subr.bf16.mxu0 %v2779_v29  ;;  %1618 = vmatprep.subr.bf16.mxu1 %v2782_v57 }
 0x64c   :  { %1578 = vmatpush1.bf16.msra.mxu0 %v2785_v49  ;;  %1619 = vmatpush1.bf16.msra.mxu1 %v2788_v50 }
 0x64d   :  { %1579 = vmatprep.subr.bf16.mxu0 %v2791_v51  ;;  %1620 = vmatprep.subr.bf16.mxu1 %v2794_v52 }
 0x650   :  { %1580 = vmatpush1.bf16.msra.mxu0 %v2797_v55  ;;  %1621 = vmatpush1.bf16.msra.mxu1 %v2800_v56 }
 0x651   :  { %1581 = vmatprep.subr.bf16.mxu0 %v2803_v58  ;;  %1622 = vmatprep.subr.bf16.mxu1 %v2806_v59  ;;  %v1554_v58 = vpop.permute.xlu0 %1553 }
 0x652   :  { %vm1555_vm15 = vcmp.eq.s32.totalorder %v1554_v58, 1 }
 0x654   :  { %1582 = vmatpush1.bf16.msra.mxu0 %v2809_v60  ;;  %1623 = vmatpush1.bf16.msra.mxu1 %v2812_v61 }
 0x6f7   :  { %v1472_v24 = vpop.f32.mrf.mxu0  ;;  %v1513_v36 = vpop.f32.mrf.mxu1 }
 0x6f8   :  { %v1520_v32 = vadd.f32 %v1472_v24, %v2925_v53  ;;  %v1522_v27 = vadd.f32 %v1513_v36, %v2928_v20 }
 0x6f9   :  { %v1474_v37 = vpop.f32.mrf.mxu0  ;;  %v1515_v38 = vpop.f32.mrf.mxu1 }
 0x6fa   :  { %v1794_v39 = vmul.f32 -1.442695, %v1520_v32  ;;  %v1521_v41 = vadd.f32 %v1474_v37, %v2926_v40  ;;  %v1523_v19 = vadd.f32 %v1515_v38, %v2927_v0  ;;  %v1683_v38 = vpop.permute.xlu1 %1682 }
 0x6fb   :  { %v1476_v42 = vpop.f32.mrf.mxu0  ;;  %v1517_v43 = vpop.f32.mrf.mxu1  ;;  %vm1684_vm0 = vcmp.eq.s32.totalorder %v1683_v38, 1 }
 0x6fc   :  { %2013 = vpow2.f32 %v1794_v39  ;;  %v1795_v14 = vmul.f32 -1.442695, %v1521_v41  ;;  %v1796_v16 = vmul.f32 -1.442695, %v1523_v19 }
 0x6fd   :  { %v1477_v2 = vpop.f32.mrf.mxu0  ;;  %v1518_v25 = vpop.f32.mrf.mxu1 }
 0x6fe   :  { %2015 = vpow2.f32 %v1795_v14 }
 0x6ff   :  { %2017 = vtanh.f32 %v1522_v27 }
 0x700   :  { %2019 = vpow2.f32 %v1796_v16 }
 0x709   :  { %v2014_v21 = vpop.eup %2013 }
 0x70a   :  { %v1527_v18 = vadd.f32 1.0, %v2014_v21 }
 0x70b   :  { %v2016_v29 = vpop.eup %2015 }
 0x70c   :  { %2021 = vrcp.f32 %v1527_v18  ;;  %v1533_v57 = vadd.f32 1.0, %v2016_v29  ;;  %v2018_v49 = vpop.eup %2017 }
 0x70d   :  { %v2020_v50 = vpop.eup %2019 }
 0x70e   :  { %2023 = vrcp.f32 %v1533_v57  ;;  %v1540_v56 = vadd.f32 1.0, %v2020_v50 }
 0x710   :  { %2025 = vrcp.f32 %v1540_v56 }
 0x719   :  { %v2022_v51 = vpop.eup %2021 }
 0x71a   :  { %v1544_v52 = vmul.f32 %v2022_v51, %v2018_v49 }
 0x71b   :  { %v2024_v55 = vpop.eup %2023 }
 0x71c   :  { %v1543_v59 = vmul.f32 %v2024_v55, %v2823_v1 }
 0x71d   :  { %v2026_v15 = vpop.eup %2025 }
 0x71e   :  { %v1545_v60 = vadd.f32 %v1544_v52, %v1543_v59 }
 0x720   :  { %2027 = vtanh.f32 %v1545_v60  ;;  %v1557_v61 = vsel %vm1555_vm15, %v1545_v60, %v2823_v1 }
 0x72d   :  { %v2028_v23 = vpop.eup %2027 }
 0x72e   :  { %v1547_v35 = vmul.f32 %v2028_v23, %v2026_v15 }
 0x730   :  { %v1556_v22 = vsel %vm1555_vm15, %v1547_v35, %v2826_v8  ;;  %v1558_v28 = vsel %vm1555_vm15, %v1547_v35, 0.0 }
 0x731   :  { %1798 = vst [vmem:[%s2887_s5 + $0x30] sm:$0xff] %v1558_v28  ;;  %v1566_v47 = vpack.c.bf16 %v1556_v22, %v1556_v22 }
 0x733   :  { %1600 = vmatmul.mubr.bf16.vlgmr.msra.gmra.mxu0 %v1566_v47  ;;  %1641 = vmatmul.mubr.bf16.vlgmr.msra.gmra.mxu1 %v1566_v47 }
 0x7f3   :  { %v1601_v33 = vpop.f32.mrf.mxu0  ;;  %v1642_v48 = vpop.f32.mrf.mxu1 }
 0x7f4   :  { %v1649_v34 = vadd.f32 %v1601_v33, %v2929_v13  ;;  %v1651_v4 = vadd.f32 %v1642_v48, %v2930_v3 }
 0x7f5   :  { %v1603_v17 = vpop.f32.mrf.mxu0  ;;  %v1644_v44 = vpop.f32.mrf.mxu1 }
 0x7f6   :  { %v1799_v26 = vmul.f32 -1.442695, %v1649_v34  ;;  %v1650_v30 = vadd.f32 %v1603_v17, %v2483_v9  ;;  %v1652_v63 = vadd.f32 %v1644_v44, %v2486_v10 }
 0x7f7   :  { %v1605_v62 = vpop.f32.mrf.mxu0  ;;  %v1646_v12 = vpop.f32.mrf.mxu1 }
 0x7f8   :  { %2029 = vpow2.f32 %v1799_v26  ;;  %v1800_v11 = vmul.f32 -1.442695, %v1650_v30  ;;  %v1801_v1 = vmul.f32 -1.442695, %v1652_v63 }
 0x7f9   :  { %v1606_v54 = vpop.f32.mrf.mxu0  ;;  %v1647_v31 = vpop.f32.mrf.mxu1 }
 0x7fa   :  { %2031 = vpow2.f32 %v1800_v11 }
 0x7fb   :  { %2033 = vtanh.f32 %v1651_v4 }
 0x7fc   :  { %2035 = vpow2.f32 %v1801_v1 }
 0x805   :  { %v2030_v5 = vpop.eup %2029 }
 0x806   :  { %v1656_v6 = vadd.f32 1.0, %v2030_v5 }
 0x807   :  { %v2032_v7 = vpop.eup %2031 }
 0x808   :  { %2037 = vrcp.f32 %v1656_v6  ;;  %v1662_v8 = vadd.f32 1.0, %v2032_v7  ;;  %v2034_v9 = vpop.eup %2033 }
 0x809   :  { %v2036_v45 = vpop.eup %2035 }
 0x80a   :  { %2039 = vrcp.f32 %v1662_v8  ;;  %v1669_v53 = vadd.f32 1.0, %v2036_v45 }
 0x80c   :  { %2041 = vrcp.f32 %v1669_v53 }
 0x815   :  { %v2038_v46 = vpop.eup %2037 }
 0x816   :  { %v1673_v24 = vmul.f32 %v2038_v46, %v2034_v9 }
 0x817   :  { %v2040_v36 = vpop.eup %2039 }
 0x818   :  { %v1672_v32 = vmul.f32 %v2040_v36, %v1557_v61 }
 0x819   :  { %v2042_v10 = vpop.eup %2041 }
 0x81a   :  { %v1674_v37 = vadd.f32 %v1673_v24, %v1672_v32 }
 0x81c   :  { %2043 = vtanh.f32 %v1674_v37 }
 0x829   :  { %v2044_v39 = vpop.eup %2043 }
 0x82a   :  { %v1676_v40 = vmul.f32 %v2044_v39, %v2042_v10 }
 0x82c   :  { %v1687_v41 = vsel %vm1684_vm0, %v1676_v40, 0.0 }
 0x82d   :  { %1803 = vst [vmem:[%s2887_s5 + $0x38] sm:$0xff] %v1687_v41 }
 0x82e   :  { %1696 = vsyncpa [#allocation6], 1 }

</bundles_post_ra>
